<compile_context>
chip_gen: v6e
topology: v6e:2x2x1
jax: 0.10.0
libtpu: 0.0.40
codegen_flags: <defaults>
</compile_context>

<pallas_src>
import functools

import jax
import jax.numpy as jnp
from jax.experimental import pallas as pl
from jax.experimental.pallas import tpu as pltpu

NEG_BIG = -1000000000.0  # matches PyTorch masked_fill value


def attflat_kernel(x_ref, mask_ref, w1_ref, b1_ref, w2_ref, b2_ref,
                   wm_ref, bm_ref, out_ref, *, compute_dtype):
    TB, S, H = x_ref.shape
    G = w2_ref.shape[1]

    x3 = x_ref[...]                                    # (TB, S, H) f32
    x2 = x3.reshape(TB * S, H)                         # layout-free: wrapper pads S to %8

    # --- MLP: Linear -> ReLU -> (dropout: identity) -> Linear, M = TB*S rows ---
    h = jnp.dot(x2.astype(compute_dtype), w1_ref[...].astype(compute_dtype),
                preferred_element_type=jnp.float32) + b1_ref[...]
    h = jnp.maximum(h, 0.0)                                                   # (TB*S, MID)
    att = jnp.dot(h.astype(compute_dtype), w2_ref[...].astype(compute_dtype),
                  preferred_element_type=jnp.float32) + b2_ref[...]           # (TB*S, G)
    att3 = att.reshape(TB, S, G)                       # layout-free leading-dim split

    # --- masked_fill(-1e9): compare+select = exact PyTorch semantics, including
    #     fully-masked rows (uniform softmax). ---
    if len(mask_ref.shape) == 3:                       # fallback layout: (TB, S, 1)
        mask3 = mask_ref[...]
    else:                                              # compact layout: (TB, S)
        mask3 = mask_ref[...].reshape(TB, S, 1)        # tiny lane->sublane relayout
    att3 = jnp.where(mask3 > 0.0, NEG_BIG, att3)

    # --- softmax over the sequence axis ---
    m = jnp.max(att3, axis=1, keepdims=True)           # (TB, 1, G)
    e = jnp.exp(att3 - m)
    denom = jnp.sum(e, axis=1, keepdims=True)          # (TB, 1, G)
    attw = e * pl.reciprocal(denom, approx=False)      # (TB, S, G)

    # --- glimpse pooling on the MXU (was VPU mult + sublane reduce):
    #     (TB, G, S) x (TB, S, H) -> (TB, G, H), contracting S ---
    attw_t = jnp.swapaxes(attw, 1, 2)                  # (TB, G, S), XLU transpose
    pooled = jnp.einsum('bgs,bsh->bgh', attw_t, x3,
                        preferred_element_type=jnp.float32)

    # --- linear_merge fused: out = bm + sum_g pooled[:,g,:] @ Wm[g*H:(g+1)*H, :]
    #     (G is static & tiny; G dots with M=TB avoid a (TB,G,H)->(TB,G*H) relayout) ---
    out = bm_ref[...]                                  # (1, H), broadcasts on first add
    for g in range(G):
        out = out + jnp.dot(pooled[:, g, :], wm_ref[g * H:(g + 1) * H, :],
                            preferred_element_type=jnp.float32)
    out_ref[...] = out


def _tpu_vmem_and_cores():
    """(physical VMEM bytes per core, TensorCores per chip), with safe fallbacks."""
    try:
        vmem = int(pltpu.get_tpu_info().vmem_capacity_bytes)
    except Exception:
        vmem = 64 * 1024 * 1024                        # conservative (v7x-sized) default
    # v7x-class parts (64 MiB VMEM / core) have 2 TensorCores per chip.
    num_tc = 2 if vmem <= 80 * 1024 * 1024 else 1
    return vmem, num_tc


def _weight_vmem_bytes(H, MID, G):
    """Resident f32 weight footprint (lane/sublane padded), worst-case x2 buffers."""
    return 2 * 4 * (H * MID          # W1
                    + 8 * MID        # b1 (1, MID) -> 8 sublanes
                    + MID * 128      # W2 (MID, G) -> 128 lanes
                    + 8 * 128        # b2
                    + G * H * H      # W_merge
                    + 8 * H)         # b_merge


def _pick_batch_tile(B, S, H, MID, G, budget_bytes, num_tc):
    """Largest batch tile TB given a per-step VMEM budget.

    Accounts for double-buffered x/mask/out tiles plus the in-kernel f32
    intermediates, including 128-lane padding of the (., S, G) tensors, the mask
    relayout copy, and the 8-sublane-padded (TB, G, H) pooled scratch."""
    s_lane = pl.cdiv(S, 128) * 128                    # (TB, S) mask: S padded to lanes
    per_b = 4 * (
        2 * S * H              # x tile, double-buffered
        + 2 * s_lane           # mask tile, double-buffered
        + 2 * H                # out tile, double-buffered
        + S * MID              # relu hidden (TB*S, MID)
        + 4 * S * 128          # att / exp / attw / attw_t, G padded to 128 lanes
        + S * 128              # mask relayout copy (TB, S, 1)
        + 8 * H                # pooled (TB, G, H), G padded to 8 sublanes
        + 2 * H                # merge accumulator + slack
    )
    cap = max(1, budget_bytes // per_b)
    if num_tc >= 2 and B >= 16:
        cap = min(cap, B // 2)                        # >= 2 grid steps -> both TCs busy
    if cap >= B:
        return B                                      # full-dim block is always legal
    n = pl.cdiv(B, cap)                               # number of grid steps
    tb = pl.cdiv(pl.cdiv(B, n), 8) * 8                # multiple of 8 -> legal (tb, H) block
    while tb > cap and tb > 8:
        n += 1
        tb = pl.cdiv(pl.cdiv(B, n), 8) * 8
    return max(8, tb)


def _make_call(kernel_fn, Bp, Sp, H, MID, G, tb, vmem_limit,
               compact_mask, buffered_weights):
    def const_spec(shape):
        idx = lambda b: (0,) * len(shape)
        if buffered_weights:
            # Grid-invariant operands never re-DMA; single-buffering halves footprint.
            return pl.BlockSpec(shape, idx, pipeline_mode=pl.Buffered(1))
        return pl.BlockSpec(shape, idx)

    if compact_mask:
        mask_spec = pl.BlockSpec((tb, Sp), lambda b: (b, 0))       # lane-dense 2-D mask
    else:
        mask_spec = pl.BlockSpec((tb, Sp, 1), lambda b: (b, 0, 0))  # legacy layout

    return pl.pallas_call(
        kernel_fn,
        out_shape=jax.ShapeDtypeStruct((Bp, H), jnp.float32),
        grid_spec=pltpu.PrefetchScalarGridSpec(
            num_scalar_prefetch=0,
            grid=(Bp // tb,),
            in_specs=[
                pl.BlockSpec((tb, Sp, H), lambda b: (b, 0, 0)),    # x, per batch tile
                mask_spec,                                          # mask, per batch tile
                const_spec((H, MID)),                               # W1 (resident)
                const_spec((1, MID)),                               # b1
                const_spec((MID, G)),                               # W2 (resident)
                const_spec((1, G)),                                 # b2
                const_spec((G * H, H)),                             # W_merge (resident)
                const_spec((1, H)),                                 # b_merge
            ],
            out_specs=pl.BlockSpec((tb, H), lambda b: (b, 0)),      # lane-dense (tb, H)
        ),
        compiler_params=pltpu.CompilerParams(
            dimension_semantics=("parallel",),
            vmem_limit_bytes=int(vmem_limit),
        ),
    )


def attflat_cap(x, x_mask, params, tb=None, compute_dtype=jnp.float32):
    """x: (B, S, H) f32; x_mask: (B, S), nonzero/True == masked. Returns (B, H) f32.

    compute_dtype=jnp.bfloat16 runs the two MLP matmuls on the MXU bf16 path
    (2-4x throughput, halves x DMA) at reduced precision; default float32 keeps
    results within 1e-5 of the PyTorch reference."""
    w1, b1, w2, b2, wm, bm = params
    B, S, H = x.shape
    MID = w1.shape[1]
    G = w2.shape[1]

    x = x.astype(jnp.float32)
    mask2 = x_mask.reshape(B, S).astype(jnp.float32)

    # Generation-aware VMEM budgeting (~45 MiB limit on v7x, ~90 MiB on v5e/v6e).
    vmem_cap, num_tc = _tpu_vmem_and_cores()
    vmem_limit = int(vmem_cap * 0.70)
    tile_budget = max(1 << 20, int(vmem_limit * 0.85) - _weight_vmem_bytes(H, MID, G))

    # Pad S to a multiple of 8 so the (TB*S, .) merges/splits are layout-free.
    # TODO(synk): a row that was fully masked in the original input now softmaxes
    #             uniformly over the padded length (degenerate case only).
    Sp = pl.cdiv(S, 8) * 8
    if Sp != S:
        x = jnp.pad(x, ((0, 0), (0, Sp - S), (0, 0)))
        mask2 = jnp.pad(mask2, ((0, 0), (0, Sp - S)), constant_values=1.0)

    if tb is None:
        tb = _pick_batch_tile(B, Sp, H, MID, G, tile_budget, num_tc)

    # Pad B to a multiple of tb; padded rows are fully masked (output == b_merge)
    # and sliced off below (no assert, no fallback-to-B).
    Bp = pl.cdiv(B, tb) * tb
    if Bp != B:
        x = jnp.pad(x, ((0, Bp - B), (0, 0), (0, 0)))
        mask2 = jnp.pad(mask2, ((0, Bp - B), (0, 0)), constant_values=1.0)

    kernel_fn = functools.partial(attflat_kernel, compute_dtype=compute_dtype)
    weights = (w1, b1, w2, b2, wm, bm)

    # Preferred config first; fall back if this JAX build rejects the compact mask
    # layout or pipeline_mode=pl.Buffered(1).
    configs = ((True, True), (True, False), (False, True), (False, False))
    out, err = None, None
    for compact_mask, buffered in configs:
        mask_in = mask2 if compact_mask else mask2[:, :, None]
        try:
            out = _make_call(kernel_fn, Bp, Sp, H, MID, G, tb, vmem_limit,
                             compact_mask, buffered)(x, mask_in, *weights)
            break
        except Exception as e:  # noqa: BLE001 - fall back to a more conservative config
            err, out = e, None
    if out is None:
        raise err
    return out[:B] if Bp != B else out


def attflat_cap_ref(x, x_mask, params):
    """Pure-JAX reference mirroring the PyTorch forward (eval mode)."""
    w1, b1, w2, b2, wm, bm = params
    h = jnp.maximum(x @ w1 + b1[0], 0.0)
    att = h @ w2 + b2[0]
    att = jnp.where(x_mask[:, :, None] > 0.0, NEG_BIG, att)
    att = jax.nn.softmax(att, axis=1)
    pooled = jnp.einsum('bsg,bsh->bgh', att, x)        # (B, G, H)
    x_atted = pooled.reshape(x.shape[0], -1)           # torch.cat(att_list, dim=1)
    return x_atted @ wm + bm[0]


if __name__ == "__main__":
    # Small synthetic config: HIDDEN_SIZE=32, FLAT_MLP_SIZE=32, FLAT_GLIMPSES=2
    B, S, H, MID, G = 2, 8, 32, 32, 2

    key = jax.random.PRNGKey(0)
    k = jax.random.split(key, 8)

    x = jax.random.normal(k[0], (B, S, H), dtype=jnp.float32)

    # mask: last 2 tokens of batch 1 are padded (True -> masked); shipped as (B, S)
    mask_bool = jnp.zeros((B, S), dtype=bool).at[1, S - 2:].set(True)
    x_mask = mask_bool.astype(jnp.float32)             # (B, S)

    # Deterministic parameter init (shapes from module __init__), stored as (in, out).
    w1 = 0.1 * jax.random.normal(k[1], (H, MID), dtype=jnp.float32)
    b1 = 0.1 * jax.random.normal(k[2], (1, MID), dtype=jnp.float32)
    w2 = 0.1 * jax.random.normal(k[3], (MID, G), dtype=jnp.float32)
    b2 = 0.1 * jax.random.normal(k[4], (1, G), dtype=jnp.float32)
    wm = 0.1 * jax.random.normal(k[5], (G * H, H), dtype=jnp.float32)
    bm = 0.1 * jax.random.normal(k[6], (1, H), dtype=jnp.float32)
    params = (w1, b1, w2, b2, wm, bm)

    out = attflat_cap(x, x_mask, params)
    out = jax.block_until_ready(out)

    ref = attflat_cap_ref(x, x_mask, params)
    assert out.shape == (B, H)
    assert jnp.allclose(out, ref, atol=1e-5, rtol=1e-5), (
        f"max abs err = {jnp.max(jnp.abs(out - ref))}")

    print("KERNEL_OK")
</pallas_src>

<mosaic_0001>
module attributes {stable_mosaic.version = 11 : i64} {
  func.func @attflat_kernel(%arg0: i32, %arg1: memref<2x8x32xf32, #tpu.memory_space<vmem>>, %arg2: memref<2x8xf32, #tpu.memory_space<vmem>>, %arg3: memref<32x32xf32, #tpu.memory_space<vmem>>, %arg4: memref<1x32xf32, #tpu.memory_space<vmem>>, %arg5: memref<32x2xf32, #tpu.memory_space<vmem>>, %arg6: memref<1x2xf32, #tpu.memory_space<vmem>>, %arg7: memref<64x32xf32, #tpu.memory_space<vmem>>, %arg8: memref<1x32xf32, #tpu.memory_space<vmem>>, %arg9: memref<2x32xf32, #tpu.memory_space<vmem>>) attributes {dimension_semantics = [#tpu.dimension_semantics<parallel>], iteration_bounds = array<i64: 1>, scalar_prefetch = 0 : i64, scratch_operands = 0 : i64, tpu.core_type = #tpu.core_type<tc>, window_params = [{transform_indices = @transform_0, window_bounds = array<i64: 2, 8, 32>}, {transform_indices = @transform_1, window_bounds = array<i64: 2, 8>}, {pipeline_mode = #tpu.pipeline_mode<synchronous>, transform_indices = @transform_2, window_bounds = array<i64: 32, 32>}, {pipeline_mode = #tpu.pipeline_mode<synchronous>, transform_indices = @transform_3, window_bounds = array<i64: 1, 32>}, {pipeline_mode = #tpu.pipeline_mode<synchronous>, transform_indices = @transform_4, window_bounds = array<i64: 32, 2>}, {pipeline_mode = #tpu.pipeline_mode<synchronous>, transform_indices = @transform_5, window_bounds = array<i64: 1, 2>}, {pipeline_mode = #tpu.pipeline_mode<synchronous>, transform_indices = @transform_6, window_bounds = array<i64: 64, 32>}, {pipeline_mode = #tpu.pipeline_mode<synchronous>, transform_indices = @transform_7, window_bounds = array<i64: 1, 32>}, {transform_indices = @transform_8, window_bounds = array<i64: 2, 32>}]} {
    %c0 = arith.constant 0 : index
    %c0_0 = arith.constant 0 : index
    %c0_1 = arith.constant 0 : index
    %0 = vector.load %arg1[%c0, %c0_0, %c0_1] : memref<2x8x32xf32, #tpu.memory_space<vmem>>, vector<2x8x32xf32>
    %1 = vector.shape_cast %0 : vector<2x8x32xf32> to vector<16x32xf32>
    %c0_2 = arith.constant 0 : index
    %c0_3 = arith.constant 0 : index
    %2 = vector.load %arg3[%c0_2, %c0_3] : memref<32x32xf32, #tpu.memory_space<vmem>>, vector<32x32xf32>
    %cst = arith.constant dense<0.000000e+00> : vector<16x32xf32>
    %3 = tpu.matmul %1, %2, %cst {dimension_numbers = #tpu.dot_dimension_numbers<[1], [0], [0], [1], [0, 0, 1, 1], [], []>} : vector<16x32xf32>, vector<32x32xf32>, vector<16x32xf32> -> vector<16x32xf32>
    %c0_4 = arith.constant 0 : index
    %c0_5 = arith.constant 0 : index
    %4 = vector.load %arg4[%c0_4, %c0_5] : memref<1x32xf32, #tpu.memory_space<vmem>>, vector<1x32xf32>
    %5 = vector.broadcast %4 : vector<1x32xf32> to vector<16x32xf32>
    %6 = arith.addf %3, %5 : vector<16x32xf32>
    %cst_6 = arith.constant 0.000000e+00 : f32
    %7 = vector.broadcast %cst_6 : f32 to vector<16x32xf32>
    %8 = arith.maximumf %6, %7 : vector<16x32xf32>
    %c0_7 = arith.constant 0 : index
    %c0_8 = arith.constant 0 : index
    %9 = vector.load %arg5[%c0_7, %c0_8] : memref<32x2xf32, #tpu.memory_space<vmem>>, vector<32x2xf32>
    %cst_9 = arith.constant dense<0.000000e+00> : vector<16x2xf32>
    %10 = tpu.matmul %8, %9, %cst_9 {dimension_numbers = #tpu.dot_dimension_numbers<[1], [0], [0], [1], [0, 0, 1, 1], [], []>} : vector<16x32xf32>, vector<32x2xf32>, vector<16x2xf32> -> vector<16x2xf32>
    %c0_10 = arith.constant 0 : index
    %c0_11 = arith.constant 0 : index
    %11 = vector.load %arg6[%c0_10, %c0_11] : memref<1x2xf32, #tpu.memory_space<vmem>>, vector<1x2xf32>
    %12 = vector.broadcast %11 : vector<1x2xf32> to vector<16x2xf32>
    %13 = arith.addf %10, %12 : vector<16x2xf32>
    %14 = vector.shape_cast %13 : vector<16x2xf32> to vector<2x8x2xf32>
    %c0_12 = arith.constant 0 : index
    %c0_13 = arith.constant 0 : index
    %15 = vector.load %arg2[%c0_12, %c0_13] : memref<2x8xf32, #tpu.memory_space<vmem>>, vector<2x8xf32>
    %16 = vector.shape_cast %15 : vector<2x8xf32> to vector<2x8x1xf32>
    %cst_14 = arith.constant 0.000000e+00 : f32
    %17 = vector.broadcast %cst_14 : f32 to vector<2x8x1xf32>
    %18 = arith.cmpf ogt, %16, %17 : vector<2x8x1xf32>
    %cst_15 = arith.constant -1.000000e+09 : f32
    %19 = vector.shape_cast %18 : vector<2x8x1xi1> to vector<2x8x1xi1>
    %20 = vector.broadcast %19 : vector<2x8x1xi1> to vector<2x8x2xi1>
    %21 = vector.broadcast %cst_15 : f32 to vector<2x8x2xf32>
    %22 = arith.select %20, %21, %14 : vector<2x8x2xi1>, vector<2x8x2xf32>
    %cst_16 = arith.constant dense<0xFF800000> : vector<2x2xf32>
    %23 = vector.multi_reduction <maximumf>, %22, %cst_16 [1] : vector<2x8x2xf32> to vector<2x2xf32>
    %24 = vector.shape_cast %23 : vector<2x2xf32> to vector<2x1x2xf32>
    %25 = vector.broadcast %24 : vector<2x1x2xf32> to vector<2x8x2xf32>
    %26 = arith.subf %22, %25 : vector<2x8x2xf32>
    %27 = math.exp %26 : vector<2x8x2xf32>
    %cst_17 = arith.constant dense<0.000000e+00> : vector<2x2xf32>
    %28 = vector.multi_reduction <add>, %27, %cst_17 [1] : vector<2x8x2xf32> to vector<2x2xf32>
    %29 = vector.shape_cast %28 : vector<2x2xf32> to vector<2x1x2xf32>
    %30 = tpu.reciprocal %29 : vector<2x1x2xf32> -> vector<2x1x2xf32>
    %31 = vector.broadcast %30 : vector<2x1x2xf32> to vector<2x8x2xf32>
    %32 = arith.mulf %27, %31 : vector<2x8x2xf32>
    %33 = tpu.transpose %32, [0, 2, 1] : vector<2x8x2xf32> -> vector<2x2x8xf32>
    "tpu.trace_start"() <{level = 10 : i32, message = "bgs,bsh->bgh"}> : () -> ()
    %cst_18 = arith.constant dense<0.000000e+00> : vector<2x2x32xf32>
    %34 = tpu.matmul %33, %0, %cst_18 {dimension_numbers = #tpu.dot_dimension_numbers<[2], [1], [1], [2], [0, 0, 0, 1, 1, 2], [0], [0]>} : vector<2x2x8xf32>, vector<2x8x32xf32>, vector<2x2x32xf32> -> vector<2x2x32xf32>
    "tpu.trace_stop"() : () -> ()
    %c0_19 = arith.constant 0 : index
    %c0_20 = arith.constant 0 : index
    %35 = vector.load %arg8[%c0_19, %c0_20] : memref<1x32xf32, #tpu.memory_space<vmem>>, vector<1x32xf32>
    %36 = vector.extract_strided_slice %34 {offsets = [0, 0, 0], sizes = [2, 1, 32], strides = [1, 1, 1]} : vector<2x2x32xf32> to vector<2x1x32xf32>
    %37 = vector.shape_cast %36 : vector<2x1x32xf32> to vector<2x32xf32>
    %c0_21 = arith.constant 0 : index
    %c0_22 = arith.constant 0 : index
    %38 = vector.load %arg7[%c0_21, %c0_22] : memref<64x32xf32, #tpu.memory_space<vmem>>, vector<32x32xf32>
    %cst_23 = arith.constant dense<0.000000e+00> : vector<2x32xf32>
    %39 = tpu.matmul %37, %38, %cst_23 {dimension_numbers = #tpu.dot_dimension_numbers<[1], [0], [0], [1], [0, 0, 1, 1], [], []>} : vector<2x32xf32>, vector<32x32xf32>, vector<2x32xf32> -> vector<2x32xf32>
    %40 = vector.broadcast %35 : vector<1x32xf32> to vector<2x32xf32>
    %41 = arith.addf %40, %39 : vector<2x32xf32>
    %42 = vector.extract_strided_slice %34 {offsets = [0, 1, 0], sizes = [2, 1, 32], strides = [1, 1, 1]} : vector<2x2x32xf32> to vector<2x1x32xf32>
    %43 = vector.shape_cast %42 : vector<2x1x32xf32> to vector<2x32xf32>
    %c32 = arith.constant 32 : index
    %c0_24 = arith.constant 0 : index
    %44 = vector.load %arg7[%c32, %c0_24] : memref<64x32xf32, #tpu.memory_space<vmem>>, vector<32x32xf32>
    %cst_25 = arith.constant dense<0.000000e+00> : vector<2x32xf32>
    %45 = tpu.matmul %43, %44, %cst_25 {dimension_numbers = #tpu.dot_dimension_numbers<[1], [0], [0], [1], [0, 0, 1, 1], [], []>} : vector<2x32xf32>, vector<32x32xf32>, vector<2x32xf32> -> vector<2x32xf32>
    %46 = arith.addf %41, %45 : vector<2x32xf32>
    %c0_26 = arith.constant 0 : index
    %c0_27 = arith.constant 0 : index
    %47 = vector.load %arg9[%c0_26, %c0_27] : memref<2x32xf32, #tpu.memory_space<vmem>>, vector<2x32xf32>
    tpu.vector_store %arg9[%c0_26, %c0_27], %46 {strides = array<i32>} : memref<2x32xf32, #tpu.memory_space<vmem>>, vector<2x32xf32>,
    return
  }
  func.func @transform_0(%arg0: i32) -> (i32, i32, i32) {
    %c0_i32 = arith.constant 0 : i32
    %c0_i32_0 = arith.constant 0 : i32
    %c0_i32_1 = arith.constant 0 : i32
    return %arg0, %c0_i32, %c0_i32_0 : i32, i32, i32
  }
  func.func @transform_1(%arg0: i32) -> (i32, i32) {
    %c0_i32 = arith.constant 0 : i32
    %c0_i32_0 = arith.constant 0 : i32
    return %arg0, %c0_i32 : i32, i32
  }
  func.func @transform_2(%arg0: i32) -> (i32, i32) {
    %c0_i32 = arith.constant 0 : i32
    %c0_i32_0 = arith.constant 0 : i32
    %c0_i32_1 = arith.constant 0 : i32
    return %c0_i32, %c0_i32_0 : i32, i32
  }
  func.func @transform_3(%arg0: i32) -> (i32, i32) {
    %c0_i32 = arith.constant 0 : i32
    %c0_i32_0 = arith.constant 0 : i32
    %c0_i32_1 = arith.constant 0 : i32
    return %c0_i32, %c0_i32_0 : i32, i32
  }
  func.func @transform_4(%arg0: i32) -> (i32, i32) {
    %c0_i32 = arith.constant 0 : i32
    %c0_i32_0 = arith.constant 0 : i32
    %c0_i32_1 = arith.constant 0 : i32
    return %c0_i32, %c0_i32_0 : i32, i32
  }
  func.func @transform_5(%arg0: i32) -> (i32, i32) {
    %c0_i32 = arith.constant 0 : i32
    %c0_i32_0 = arith.constant 0 : i32
    %c0_i32_1 = arith.constant 0 : i32
    return %c0_i32, %c0_i32_0 : i32, i32
  }
  func.func @transform_6(%arg0: i32) -> (i32, i32) {
    %c0_i32 = arith.constant 0 : i32
    %c0_i32_0 = arith.constant 0 : i32
    %c0_i32_1 = arith.constant 0 : i32
    return %c0_i32, %c0_i32_0 : i32, i32
  }
  func.func @transform_7(%arg0: i32) -> (i32, i32) {
    %c0_i32 = arith.constant 0 : i32
    %c0_i32_0 = arith.constant 0 : i32
    %c0_i32_1 = arith.constant 0 : i32
    return %c0_i32, %c0_i32_0 : i32, i32
  }
  func.func @transform_8(%arg0: i32) -> (i32, i32) {
    %c0_i32 = arith.constant 0 : i32
    %c0_i32_0 = arith.constant 0 : i32
    return %arg0, %c0_i32 : i32, i32
  }
}

module attributes {stable_mosaic.version = 11 : i64} {
  func.func @attflat_kernel(%arg0: i32, %arg1: memref<2x8x32xf32, #tpu.memory_space<vmem>>, %arg2: memref<2x8xf32, #tpu.memory_space<vmem>>, %arg3: memref<32x32xf32, #tpu.memory_space<vmem>>, %arg4: memref<1x32xf32, #tpu.memory_space<vmem>>, %arg5: memref<32x2xf32, #tpu.memory_space<vmem>>, %arg6: memref<1x2xf32, #tpu.memory_space<vmem>>, %arg7: memref<64x32xf32, #tpu.memory_space<vmem>>, %arg8: memref<1x32xf32, #tpu.memory_space<vmem>>, %arg9: memref<2x32xf32, #tpu.memory_space<vmem>>) attributes {dimension_semantics = [#tpu.dimension_semantics<parallel>], iteration_bounds = array<i64: 1>, scalar_prefetch = 0 : i64, scratch_operands = 0 : i64, tpu.core_type = #tpu.core_type<tc>, window_params = [{transform_indices = @transform_0, window_bounds = array<i64: 2, 8, 32>}, {transform_indices = @transform_1, window_bounds = array<i64: 2, 8>}, {pipeline_mode = #tpu.pipeline_mode<synchronous>, transform_indices = @transform_2, window_bounds = array<i64: 32, 32>}, {pipeline_mode = #tpu.pipeline_mode<synchronous>, transform_indices = @transform_3, window_bounds = array<i64: 1, 32>}, {pipeline_mode = #tpu.pipeline_mode<synchronous>, transform_indices = @transform_4, window_bounds = array<i64: 32, 2>}, {pipeline_mode = #tpu.pipeline_mode<synchronous>, transform_indices = @transform_5, window_bounds = array<i64: 1, 2>}, {pipeline_mode = #tpu.pipeline_mode<synchronous>, transform_indices = @transform_6, window_bounds = array<i64: 64, 32>}, {pipeline_mode = #tpu.pipeline_mode<synchronous>, transform_indices = @transform_7, window_bounds = array<i64: 1, 32>}, {transform_indices = @transform_8, window_bounds = array<i64: 2, 32>}]} {
    %c0 = arith.constant 0 : index
    %c0_0 = arith.constant 0 : index
    %c0_1 = arith.constant 0 : index
    %0 = vector.load %arg1[%c0, %c0_0, %c0_1] : memref<2x8x32xf32, #tpu.memory_space<vmem>>, vector<2x8x32xf32>
    %1 = vector.shape_cast %0 : vector<2x8x32xf32> to vector<16x32xf32>
    %c0_2 = arith.constant 0 : index
    %c0_3 = arith.constant 0 : index
    %2 = vector.load %arg3[%c0_2, %c0_3] : memref<32x32xf32, #tpu.memory_space<vmem>>, vector<32x32xf32>
    %cst = arith.constant dense<0.000000e+00> : vector<16x32xf32>
    %3 = tpu.matmul %1, %2, %cst {dimension_numbers = #tpu.dot_dimension_numbers<[1], [0], [0], [1], [0, 0, 1, 1], [], []>} : vector<16x32xf32>, vector<32x32xf32>, vector<16x32xf32> -> vector<16x32xf32>
    %c0_4 = arith.constant 0 : index
    %c0_5 = arith.constant 0 : index
    %4 = vector.load %arg4[%c0_4, %c0_5] : memref<1x32xf32, #tpu.memory_space<vmem>>, vector<1x32xf32>
    %5 = vector.broadcast %4 : vector<1x32xf32> to vector<16x32xf32>
    %6 = arith.addf %3, %5 : vector<16x32xf32>
    %cst_6 = arith.constant 0.000000e+00 : f32
    %7 = vector.broadcast %cst_6 : f32 to vector<16x32xf32>
    %8 = arith.maximumf %6, %7 : vector<16x32xf32>
    %c0_7 = arith.constant 0 : index
    %c0_8 = arith.constant 0 : index
    %9 = vector.load %arg5[%c0_7, %c0_8] : memref<32x2xf32, #tpu.memory_space<vmem>>, vector<32x2xf32>
    %cst_9 = arith.constant dense<0.000000e+00> : vector<16x2xf32>
    %10 = tpu.matmul %8, %9, %cst_9 {dimension_numbers = #tpu.dot_dimension_numbers<[1], [0], [0], [1], [0, 0, 1, 1], [], []>} : vector<16x32xf32>, vector<32x2xf32>, vector<16x2xf32> -> vector<16x2xf32>
    %c0_10 = arith.constant 0 : index
    %c0_11 = arith.constant 0 : index
    %11 = vector.load %arg6[%c0_10, %c0_11] : memref<1x2xf32, #tpu.memory_space<vmem>>, vector<1x2xf32>
    %12 = vector.broadcast %11 : vector<1x2xf32> to vector<16x2xf32>
    %13 = arith.addf %10, %12 : vector<16x2xf32>
    %14 = vector.shape_cast %13 : vector<16x2xf32> to vector<2x8x2xf32>
    %c0_12 = arith.constant 0 : index
    %c0_13 = arith.constant 0 : index
    %15 = vector.load %arg2[%c0_12, %c0_13] : memref<2x8xf32, #tpu.memory_space<vmem>>, vector<2x8xf32>
    %16 = vector.shape_cast %15 : vector<2x8xf32> to vector<2x8x1xf32>
    %cst_14 = arith.constant 0.000000e+00 : f32
    %17 = vector.broadcast %cst_14 : f32 to vector<2x8x1xf32>
    %18 = arith.cmpf ogt, %16, %17 : vector<2x8x1xf32>
    %cst_15 = arith.constant -1.000000e+09 : f32
    %19 = vector.shape_cast %18 : vector<2x8x1xi1> to vector<2x8x1xi1>
    %20 = vector.broadcast %19 : vector<2x8x1xi1> to vector<2x8x2xi1>
    %21 = vector.broadcast %cst_15 : f32 to vector<2x8x2xf32>
    %22 = arith.select %20, %21, %14 : vector<2x8x2xi1>, vector<2x8x2xf32>
    %cst_16 = arith.constant dense<0xFF800000> : vector<2x2xf32>
    %23 = vector.multi_reduction <maximumf>, %22, %cst_16 [1] : vector<2x8x2xf32> to vector<2x2xf32>
    %24 = vector.shape_cast %23 : vector<2x2xf32> to vector<2x1x2xf32>
    %25 = vector.broadcast %24 : vector<2x1x2xf32> to vector<2x8x2xf32>
    %26 = arith.subf %22, %25 : vector<2x8x2xf32>
    %27 = math.exp %26 : vector<2x8x2xf32>
    %cst_17 = arith.constant dense<0.000000e+00> : vector<2x2xf32>
    %28 = vector.multi_reduction <add>, %27, %cst_17 [1] : vector<2x8x2xf32> to vector<2x2xf32>
    %29 = vector.shape_cast %28 : vector<2x2xf32> to vector<2x1x2xf32>
    %30 = tpu.reciprocal %29 : vector<2x1x2xf32> -> vector<2x1x2xf32>
    %31 = vector.broadcast %30 : vector<2x1x2xf32> to vector<2x8x2xf32>
    %32 = arith.mulf %27, %31 : vector<2x8x2xf32>
    %33 = tpu.transpose %32, [0, 2, 1] : vector<2x8x2xf32> -> vector<2x2x8xf32>
    "tpu.trace_start"() <{level = 10 : i32, message = "bgs,bsh->bgh"}> : () -> ()
    %cst_18 = arith.constant dense<0.000000e+00> : vector<2x2x32xf32>
    %34 = tpu.matmul %33, %0, %cst_18 {dimension_numbers = #tpu.dot_dimension_numbers<[2], [1], [1], [2], [0, 0, 0, 1, 1, 2], [0], [0]>} : vector<2x2x8xf32>, vector<2x8x32xf32>, vector<2x2x32xf32> -> vector<2x2x32xf32>
    "tpu.trace_stop"() : () -> ()
    %c0_19 = arith.constant 0 : index
    %c0_20 = arith.constant 0 : index
    %35 = vector.load %arg8[%c0_19, %c0_20] : memref<1x32xf32, #tpu.memory_space<vmem>>, vector<1x32xf32>
    %36 = vector.extract_strided_slice %34 {offsets = [0, 0, 0], sizes = [2, 1, 32], strides = [1, 1, 1]} : vector<2x2x32xf32> to vector<2x1x32xf32>
    %37 = vector.shape_cast %36 : vector<2x1x32xf32> to vector<2x32xf32>
    %c0_21 = arith.constant 0 : index
    %c0_22 = arith.constant 0 : index
    %38 = vector.load %arg7[%c0_21, %c0_22] : memref<64x32xf32, #tpu.memory_space<vmem>>, vector<32x32xf32>
    %cst_23 = arith.constant dense<0.000000e+00> : vector<2x32xf32>
    %39 = tpu.matmul %37, %38, %cst_23 {dimension_numbers = #tpu.dot_dimension_numbers<[1], [0], [0], [1], [0, 0, 1, 1], [], []>} : vector<2x32xf32>, vector<32x32xf32>, vector<2x32xf32> -> vector<2x32xf32>
    %40 = vector.broadcast %35 : vector<1x32xf32> to vector<2x32xf32>
    %41 = arith.addf %40, %39 : vector<2x32xf32>
    %42 = vector.extract_strided_slice %34 {offsets = [0, 1, 0], sizes = [2, 1, 32], strides = [1, 1, 1]} : vector<2x2x32xf32> to vector<2x1x32xf32>
    %43 = vector.shape_cast %42 : vector<2x1x32xf32> to vector<2x32xf32>
    %c32 = arith.constant 32 : index
    %c0_24 = arith.constant 0 : index
    %44 = vector.load %arg7[%c32, %c0_24] : memref<64x32xf32, #tpu.memory_space<vmem>>, vector<32x32xf32>
    %cst_25 = arith.constant dense<0.000000e+00> : vector<2x32xf32>
    %45 = tpu.matmul %43, %44, %cst_25 {dimension_numbers = #tpu.dot_dimension_numbers<[1], [0], [0], [1], [0, 0, 1, 1], [], []>} : vector<2x32xf32>, vector<32x32xf32>, vector<2x32xf32> -> vector<2x32xf32>
    %46 = arith.addf %41, %45 : vector<2x32xf32>
    %c0_26 = arith.constant 0 : index
    %c0_27 = arith.constant 0 : index
    %47 = vector.load %arg9[%c0_26, %c0_27] : memref<2x32xf32, #tpu.memory_space<vmem>>, vector<2x32xf32>
    tpu.vector_store %arg9[%c0_26, %c0_27], %46 {strides = array<i32>} : memref<2x32xf32, #tpu.memory_space<vmem>>, vector<2x32xf32>,
    return
  }
  func.func @transform_0(%arg0: i32) -> (i32, i32, i32) {
    %c0_i32 = arith.constant 0 : i32
    %c0_i32_0 = arith.constant 0 : i32
    %c0_i32_1 = arith.constant 0 : i32
    return %arg0, %c0_i32, %c0_i32_0 : i32, i32, i32
  }
  func.func @transform_1(%arg0: i32) -> (i32, i32) {
    %c0_i32 = arith.constant 0 : i32
    %c0_i32_0 = arith.constant 0 : i32
    return %arg0, %c0_i32 : i32, i32
  }
  func.func @transform_2(%arg0: i32) -> (i32, i32) {
    %c0_i32 = arith.constant 0 : i32
    %c0_i32_0 = arith.constant 0 : i32
    %c0_i32_1 = arith.constant 0 : i32
    return %c0_i32, %c0_i32_0 : i32, i32
  }
  func.func @transform_3(%arg0: i32) -> (i32, i32) {
    %c0_i32 = arith.constant 0 : i32
    %c0_i32_0 = arith.constant 0 : i32
    %c0_i32_1 = arith.constant 0 : i32
    return %c0_i32, %c0_i32_0 : i32, i32
  }
  func.func @transform_4(%arg0: i32) -> (i32, i32) {
    %c0_i32 = arith.constant 0 : i32
    %c0_i32_0 = arith.constant 0 : i32
    %c0_i32_1 = arith.constant 0 : i32
    return %c0_i32, %c0_i32_0 : i32, i32
  }
  func.func @transform_5(%arg0: i32) -> (i32, i32) {
    %c0_i32 = arith.constant 0 : i32
    %c0_i32_0 = arith.constant 0 : i32
    %c0_i32_1 = arith.constant 0 : i32
    return %c0_i32, %c0_i32_0 : i32, i32
  }
  func.func @transform_6(%arg0: i32) -> (i32, i32) {
    %c0_i32 = arith.constant 0 : i32
    %c0_i32_0 = arith.constant 0 : i32
    %c0_i32_1 = arith.constant 0 : i32
    return %c0_i32, %c0_i32_0 : i32, i32
  }
  func.func @transform_7(%arg0: i32) -> (i32, i32) {
    %c0_i32 = arith.constant 0 : i32
    %c0_i32_0 = arith.constant 0 : i32
    %c0_i32_1 = arith.constant 0 : i32
    return %c0_i32, %c0_i32_0 : i32, i32
  }
  func.func @transform_8(%arg0: i32) -> (i32, i32) {
    %c0_i32 = arith.constant 0 : i32
    %c0_i32_0 = arith.constant 0 : i32
    return %arg0, %c0_i32 : i32, i32
  }
}

module attributes {stable_mosaic.version = 11 : i64} {
  func.func @attflat_kernel(%arg0: i32, %arg1: memref<2x8x32xf32, #tpu.memory_space<vmem>>, %arg2: memref<2x8x1xf32, #tpu.memory_space<vmem>>, %arg3: memref<32x32xf32, #tpu.memory_space<vmem>>, %arg4: memref<1x32xf32, #tpu.memory_space<vmem>>, %arg5: memref<32x2xf32, #tpu.memory_space<vmem>>, %arg6: memref<1x2xf32, #tpu.memory_space<vmem>>, %arg7: memref<64x32xf32, #tpu.memory_space<vmem>>, %arg8: memref<1x32xf32, #tpu.memory_space<vmem>>, %arg9: memref<2x32xf32, #tpu.memory_space<vmem>>) attributes {dimension_semantics = [#tpu.dimension_semantics<parallel>], iteration_bounds = array<i64: 1>, scalar_prefetch = 0 : i64, scratch_operands = 0 : i64, tpu.core_type = #tpu.core_type<tc>, window_params = [{transform_indices = @transform_0, window_bounds = array<i64: 2, 8, 32>}, {transform_indices = @transform_1, window_bounds = array<i64: 2, 8, 1>}, {pipeline_mode = #tpu.pipeline_mode<synchronous>, transform_indices = @transform_2, window_bounds = array<i64: 32, 32>}, {pipeline_mode = #tpu.pipeline_mode<synchronous>, transform_indices = @transform_3, window_bounds = array<i64: 1, 32>}, {pipeline_mode = #tpu.pipeline_mode<synchronous>, transform_indices = @transform_4, window_bounds = array<i64: 32, 2>}, {pipeline_mode = #tpu.pipeline_mode<synchronous>, transform_indices = @transform_5, window_bounds = array<i64: 1, 2>}, {pipeline_mode = #tpu.pipeline_mode<synchronous>, transform_indices = @transform_6, window_bounds = array<i64: 64, 32>}, {pipeline_mode = #tpu.pipeline_mode<synchronous>, transform_indices = @transform_7, window_bounds = array<i64: 1, 32>}, {transform_indices = @transform_8, window_bounds = array<i64: 2, 32>}]} {
    %c0 = arith.constant 0 : index
    %c0_0 = arith.constant 0 : index
    %c0_1 = arith.constant 0 : index
    %0 = vector.load %arg1[%c0, %c0_0, %c0_1] : memref<2x8x32xf32, #tpu.memory_space<vmem>>, vector<2x8x32xf32>
    %1 = vector.shape_cast %0 : vector<2x8x32xf32> to vector<16x32xf32>
    %c0_2 = arith.constant 0 : index
    %c0_3 = arith.constant 0 : index
    %2 = vector.load %arg3[%c0_2, %c0_3] : memref<32x32xf32, #tpu.memory_space<vmem>>, vector<32x32xf32>
    %cst = arith.constant dense<0.000000e+00> : vector<16x32xf32>
    %3 = tpu.matmul %1, %2, %cst {dimension_numbers = #tpu.dot_dimension_numbers<[1], [0], [0], [1], [0, 0, 1, 1], [], []>} : vector<16x32xf32>, vector<32x32xf32>, vector<16x32xf32> -> vector<16x32xf32>
    %c0_4 = arith.constant 0 : index
    %c0_5 = arith.constant 0 : index
    %4 = vector.load %arg4[%c0_4, %c0_5] : memref<1x32xf32, #tpu.memory_space<vmem>>, vector<1x32xf32>
    %5 = vector.broadcast %4 : vector<1x32xf32> to vector<16x32xf32>
    %6 = arith.addf %3, %5 : vector<16x32xf32>
    %cst_6 = arith.constant 0.000000e+00 : f32
    %7 = vector.broadcast %cst_6 : f32 to vector<16x32xf32>
    %8 = arith.maximumf %6, %7 : vector<16x32xf32>
    %c0_7 = arith.constant 0 : index
    %c0_8 = arith.constant 0 : index
    %9 = vector.load %arg5[%c0_7, %c0_8] : memref<32x2xf32, #tpu.memory_space<vmem>>, vector<32x2xf32>
    %cst_9 = arith.constant dense<0.000000e+00> : vector<16x2xf32>
    %10 = tpu.matmul %8, %9, %cst_9 {dimension_numbers = #tpu.dot_dimension_numbers<[1], [0], [0], [1], [0, 0, 1, 1], [], []>} : vector<16x32xf32>, vector<32x2xf32>, vector<16x2xf32> -> vector<16x2xf32>
    %c0_10 = arith.constant 0 : index
    %c0_11 = arith.constant 0 : index
    %11 = vector.load %arg6[%c0_10, %c0_11] : memref<1x2xf32, #tpu.memory_space<vmem>>, vector<1x2xf32>
    %12 = vector.broadcast %11 : vector<1x2xf32> to vector<16x2xf32>
    %13 = arith.addf %10, %12 : vector<16x2xf32>
    %14 = vector.shape_cast %13 : vector<16x2xf32> to vector<2x8x2xf32>
    %c0_12 = arith.constant 0 : index
    %c0_13 = arith.constant 0 : index
    %c0_14 = arith.constant 0 : index
    %15 = vector.load %arg2[%c0_12, %c0_13, %c0_14] : memref<2x8x1xf32, #tpu.memory_space<vmem>>, vector<2x8x1xf32>
    %cst_15 = arith.constant 0.000000e+00 : f32
    %16 = vector.broadcast %cst_15 : f32 to vector<2x8x1xf32>
    %17 = arith.cmpf ogt, %15, %16 : vector<2x8x1xf32>
    %cst_16 = arith.constant -1.000000e+09 : f32
    %18 = vector.shape_cast %17 : vector<2x8x1xi1> to vector<2x8x1xi1>
    %19 = vector.broadcast %18 : vector<2x8x1xi1> to vector<2x8x2xi1>
    %20 = vector.broadcast %cst_16 : f32 to vector<2x8x2xf32>
    %21 = arith.select %19, %20, %14 : vector<2x8x2xi1>, vector<2x8x2xf32>
    %cst_17 = arith.constant dense<0xFF800000> : vector<2x2xf32>
    %22 = vector.multi_reduction <maximumf>, %21, %cst_17 [1] : vector<2x8x2xf32> to vector<2x2xf32>
    %23 = vector.shape_cast %22 : vector<2x2xf32> to vector<2x1x2xf32>
    %24 = vector.broadcast %23 : vector<2x1x2xf32> to vector<2x8x2xf32>
    %25 = arith.subf %21, %24 : vector<2x8x2xf32>
    %26 = math.exp %25 : vector<2x8x2xf32>
    %cst_18 = arith.constant dense<0.000000e+00> : vector<2x2xf32>
    %27 = vector.multi_reduction <add>, %26, %cst_18 [1] : vector<2x8x2xf32> to vector<2x2xf32>
    %28 = vector.shape_cast %27 : vector<2x2xf32> to vector<2x1x2xf32>
    %29 = tpu.reciprocal %28 : vector<2x1x2xf32> -> vector<2x1x2xf32>
    %30 = vector.broadcast %29 : vector<2x1x2xf32> to vector<2x8x2xf32>
    %31 = arith.mulf %26, %30 : vector<2x8x2xf32>
    %32 = tpu.transpose %31, [0, 2, 1] : vector<2x8x2xf32> -> vector<2x2x8xf32>
    "tpu.trace_start"() <{level = 10 : i32, message = "bgs,bsh->bgh"}> : () -> ()
    %cst_19 = arith.constant dense<0.000000e+00> : vector<2x2x32xf32>
    %33 = tpu.matmul %32, %0, %cst_19 {dimension_numbers = #tpu.dot_dimension_numbers<[2], [1], [1], [2], [0, 0, 0, 1, 1, 2], [0], [0]>} : vector<2x2x8xf32>, vector<2x8x32xf32>, vector<2x2x32xf32> -> vector<2x2x32xf32>
    "tpu.trace_stop"() : () -> ()
    %c0_20 = arith.constant 0 : index
    %c0_21 = arith.constant 0 : index
    %34 = vector.load %arg8[%c0_20, %c0_21] : memref<1x32xf32, #tpu.memory_space<vmem>>, vector<1x32xf32>
    %35 = vector.extract_strided_slice %33 {offsets = [0, 0, 0], sizes = [2, 1, 32], strides = [1, 1, 1]} : vector<2x2x32xf32> to vector<2x1x32xf32>
    %36 = vector.shape_cast %35 : vector<2x1x32xf32> to vector<2x32xf32>
    %c0_22 = arith.constant 0 : index
    %c0_23 = arith.constant 0 : index
    %37 = vector.load %arg7[%c0_22, %c0_23] : memref<64x32xf32, #tpu.memory_space<vmem>>, vector<32x32xf32>
    %cst_24 = arith.constant dense<0.000000e+00> : vector<2x32xf32>
    %38 = tpu.matmul %36, %37, %cst_24 {dimension_numbers = #tpu.dot_dimension_numbers<[1], [0], [0], [1], [0, 0, 1, 1], [], []>} : vector<2x32xf32>, vector<32x32xf32>, vector<2x32xf32> -> vector<2x32xf32>
    %39 = vector.broadcast %34 : vector<1x32xf32> to vector<2x32xf32>
    %40 = arith.addf %39, %38 : vector<2x32xf32>
    %41 = vector.extract_strided_slice %33 {offsets = [0, 1, 0], sizes = [2, 1, 32], strides = [1, 1, 1]} : vector<2x2x32xf32> to vector<2x1x32xf32>
    %42 = vector.shape_cast %41 : vector<2x1x32xf32> to vector<2x32xf32>
    %c32 = arith.constant 32 : index
    %c0_25 = arith.constant 0 : index
    %43 = vector.load %arg7[%c32, %c0_25] : memref<64x32xf32, #tpu.memory_space<vmem>>, vector<32x32xf32>
    %cst_26 = arith.constant dense<0.000000e+00> : vector<2x32xf32>
    %44 = tpu.matmul %42, %43, %cst_26 {dimension_numbers = #tpu.dot_dimension_numbers<[1], [0], [0], [1], [0, 0, 1, 1], [], []>} : vector<2x32xf32>, vector<32x32xf32>, vector<2x32xf32> -> vector<2x32xf32>
    %45 = arith.addf %40, %44 : vector<2x32xf32>
    %c0_27 = arith.constant 0 : index
    %c0_28 = arith.constant 0 : index
    %46 = vector.load %arg9[%c0_27, %c0_28] : memref<2x32xf32, #tpu.memory_space<vmem>>, vector<2x32xf32>
    tpu.vector_store %arg9[%c0_27, %c0_28], %45 {strides = array<i32>} : memref<2x32xf32, #tpu.memory_space<vmem>>, vector<2x32xf32>,
    return
  }
  func.func @transform_0(%arg0: i32) -> (i32, i32, i32) {
    %c0_i32 = arith.constant 0 : i32
    %c0_i32_0 = arith.constant 0 : i32
    %c0_i32_1 = arith.constant 0 : i32
    return %arg0, %c0_i32, %c0_i32_0 : i32, i32, i32
  }
  func.func @transform_1(%arg0: i32) -> (i32, i32, i32) {
    %c0_i32 = arith.constant 0 : i32
    %c0_i32_0 = arith.constant 0 : i32
    %c0_i32_1 = arith.constant 0 : i32
    return %arg0, %c0_i32, %c0_i32_0 : i32, i32, i32
  }
  func.func @transform_2(%arg0: i32) -> (i32, i32) {
    %c0_i32 = arith.constant 0 : i32
    %c0_i32_0 = arith.constant 0 : i32
    %c0_i32_1 = arith.constant 0 : i32
    return %c0_i32, %c0_i32_0 : i32, i32
  }
  func.func @transform_3(%arg0: i32) -> (i32, i32) {
    %c0_i32 = arith.constant 0 : i32
    %c0_i32_0 = arith.constant 0 : i32
    %c0_i32_1 = arith.constant 0 : i32
    return %c0_i32, %c0_i32_0 : i32, i32
  }
  func.func @transform_4(%arg0: i32) -> (i32, i32) {
    %c0_i32 = arith.constant 0 : i32
    %c0_i32_0 = arith.constant 0 : i32
    %c0_i32_1 = arith.constant 0 : i32
    return %c0_i32, %c0_i32_0 : i32, i32
  }
  func.func @transform_5(%arg0: i32) -> (i32, i32) {
    %c0_i32 = arith.constant 0 : i32
    %c0_i32_0 = arith.constant 0 : i32
    %c0_i32_1 = arith.constant 0 : i32
    return %c0_i32, %c0_i32_0 : i32, i32
  }
  func.func @transform_6(%arg0: i32) -> (i32, i32) {
    %c0_i32 = arith.constant 0 : i32
    %c0_i32_0 = arith.constant 0 : i32
    %c0_i32_1 = arith.constant 0 : i32
    return %c0_i32, %c0_i32_0 : i32, i32
  }
  func.func @transform_7(%arg0: i32) -> (i32, i32) {
    %c0_i32 = arith.constant 0 : i32
    %c0_i32_0 = arith.constant 0 : i32
    %c0_i32_1 = arith.constant 0 : i32
    return %c0_i32, %c0_i32_0 : i32, i32
  }
  func.func @transform_8(%arg0: i32) -> (i32, i32) {
    %c0_i32 = arith.constant 0 : i32
    %c0_i32_0 = arith.constant 0 : i32
    return %arg0, %c0_i32 : i32, i32
  }
}

module attributes {stable_mosaic.version = 11 : i64} {
  func.func @attflat_kernel(%arg0: i32, %arg1: memref<2x8x32xf32, #tpu.memory_space<vmem>>, %arg2: memref<2x8x1xf32, #tpu.memory_space<vmem>>, %arg3: memref<32x32xf32, #tpu.memory_space<vmem>>, %arg4: memref<1x32xf32, #tpu.memory_space<vmem>>, %arg5: memref<32x2xf32, #tpu.memory_space<vmem>>, %arg6: memref<1x2xf32, #tpu.memory_space<vmem>>, %arg7: memref<64x32xf32, #tpu.memory_space<vmem>>, %arg8: memref<1x32xf32, #tpu.memory_space<vmem>>, %arg9: memref<2x32xf32, #tpu.memory_space<vmem>>) attributes {dimension_semantics = [#tpu.dimension_semantics<parallel>], iteration_bounds = array<i64: 1>, scalar_prefetch = 0 : i64, scratch_operands = 0 : i64, tpu.core_type = #tpu.core_type<tc>, window_params = [{transform_indices = @transform_0, window_bounds = array<i64: 2, 8, 32>}, {transform_indices = @transform_1, window_bounds = array<i64: 2, 8, 1>}, {pipeline_mode = #tpu.pipeline_mode<synchronous>, transform_indices = @transform_2, window_bounds = array<i64: 32, 32>}, {pipeline_mode = #tpu.pipeline_mode<synchronous>, transform_indices = @transform_3, window_bounds = array<i64: 1, 32>}, {pipeline_mode = #tpu.pipeline_mode<synchronous>, transform_indices = @transform_4, window_bounds = array<i64: 32, 2>}, {pipeline_mode = #tpu.pipeline_mode<synchronous>, transform_indices = @transform_5, window_bounds = array<i64: 1, 2>}, {pipeline_mode = #tpu.pipeline_mode<synchronous>, transform_indices = @transform_6, window_bounds = array<i64: 64, 32>}, {pipeline_mode = #tpu.pipeline_mode<synchronous>, transform_indices = @transform_7, window_bounds = array<i64: 1, 32>}, {transform_indices = @transform_8, window_bounds = array<i64: 2, 32>}]} {
    %c0 = arith.constant 0 : index
    %c0_0 = arith.constant 0 : index
    %c0_1 = arith.constant 0 : index
    %0 = vector.load %arg1[%c0, %c0_0, %c0_1] : memref<2x8x32xf32, #tpu.memory_space<vmem>>, vector<2x8x32xf32>
    %1 = vector.shape_cast %0 : vector<2x8x32xf32> to vector<16x32xf32>
    %c0_2 = arith.constant 0 : index
    %c0_3 = arith.constant 0 : index
    %2 = vector.load %arg3[%c0_2, %c0_3] : memref<32x32xf32, #tpu.memory_space<vmem>>, vector<32x32xf32>
    %cst = arith.constant dense<0.000000e+00> : vector<16x32xf32>
    %3 = tpu.matmul %1, %2, %cst {dimension_numbers = #tpu.dot_dimension_numbers<[1], [0], [0], [1], [0, 0, 1, 1], [], []>} : vector<16x32xf32>, vector<32x32xf32>, vector<16x32xf32> -> vector<16x32xf32>
    %c0_4 = arith.constant 0 : index
    %c0_5 = arith.constant 0 : index
    %4 = vector.load %arg4[%c0_4, %c0_5] : memref<1x32xf32, #tpu.memory_space<vmem>>, vector<1x32xf32>
    %5 = vector.broadcast %4 : vector<1x32xf32> to vector<16x32xf32>
    %6 = arith.addf %3, %5 : vector<16x32xf32>
    %cst_6 = arith.constant 0.000000e+00 : f32
    %7 = vector.broadcast %cst_6 : f32 to vector<16x32xf32>
    %8 = arith.maximumf %6, %7 : vector<16x32xf32>
    %c0_7 = arith.constant 0 : index
    %c0_8 = arith.constant 0 : index
    %9 = vector.load %arg5[%c0_7, %c0_8] : memref<32x2xf32, #tpu.memory_space<vmem>>, vector<32x2xf32>
    %cst_9 = arith.constant dense<0.000000e+00> : vector<16x2xf32>
    %10 = tpu.matmul %8, %9, %cst_9 {dimension_numbers = #tpu.dot_dimension_numbers<[1], [0], [0], [1], [0, 0, 1, 1], [], []>} : vector<16x32xf32>, vector<32x2xf32>, vector<16x2xf32> -> vector<16x2xf32>
    %c0_10 = arith.constant 0 : index
    %c0_11 = arith.constant 0 : index
    %11 = vector.load %arg6[%c0_10, %c0_11] : memref<1x2xf32, #tpu.memory_space<vmem>>, vector<1x2xf32>
    %12 = vector.broadcast %11 : vector<1x2xf32> to vector<16x2xf32>
    %13 = arith.addf %10, %12 : vector<16x2xf32>
    %14 = vector.shape_cast %13 : vector<16x2xf32> to vector<2x8x2xf32>
    %c0_12 = arith.constant 0 : index
    %c0_13 = arith.constant 0 : index
    %c0_14 = arith.constant 0 : index
    %15 = vector.load %arg2[%c0_12, %c0_13, %c0_14] : memref<2x8x1xf32, #tpu.memory_space<vmem>>, vector<2x8x1xf32>
    %cst_15 = arith.constant 0.000000e+00 : f32
    %16 = vector.broadcast %cst_15 : f32 to vector<2x8x1xf32>
    %17 = arith.cmpf ogt, %15, %16 : vector<2x8x1xf32>
    %cst_16 = arith.constant -1.000000e+09 : f32
    %18 = vector.shape_cast %17 : vector<2x8x1xi1> to vector<2x8x1xi1>
    %19 = vector.broadcast %18 : vector<2x8x1xi1> to vector<2x8x2xi1>
    %20 = vector.broadcast %cst_16 : f32 to vector<2x8x2xf32>
    %21 = arith.select %19, %20, %14 : vector<2x8x2xi1>, vector<2x8x2xf32>
    %cst_17 = arith.constant dense<0xFF800000> : vector<2x2xf32>
    %22 = vector.multi_reduction <maximumf>, %21, %cst_17 [1] : vector<2x8x2xf32> to vector<2x2xf32>
    %23 = vector.shape_cast %22 : vector<2x2xf32> to vector<2x1x2xf32>
    %24 = vector.broadcast %23 : vector<2x1x2xf32> to vector<2x8x2xf32>
    %25 = arith.subf %21, %24 : vector<2x8x2xf32>
    %26 = math.exp %25 : vector<2x8x2xf32>
    %cst_18 = arith.constant dense<0.000000e+00> : vector<2x2xf32>
    %27 = vector.multi_reduction <add>, %26, %cst_18 [1] : vector<2x8x2xf32> to vector<2x2xf32>
    %28 = vector.shape_cast %27 : vector<2x2xf32> to vector<2x1x2xf32>
    %29 = tpu.reciprocal %28 : vector<2x1x2xf32> -> vector<2x1x2xf32>
    %30 = vector.broadcast %29 : vector<2x1x2xf32> to vector<2x8x2xf32>
    %31 = arith.mulf %26, %30 : vector<2x8x2xf32>
    %32 = tpu.transpose %31, [0, 2, 1] : vector<2x8x2xf32> -> vector<2x2x8xf32>
    "tpu.trace_start"() <{level = 10 : i32, message = "bgs,bsh->bgh"}> : () -> ()
    %cst_19 = arith.constant dense<0.000000e+00> : vector<2x2x32xf32>
    %33 = tpu.matmul %32, %0, %cst_19 {dimension_numbers = #tpu.dot_dimension_numbers<[2], [1], [1], [2], [0, 0, 0, 1, 1, 2], [0], [0]>} : vector<2x2x8xf32>, vector<2x8x32xf32>, vector<2x2x32xf32> -> vector<2x2x32xf32>
    "tpu.trace_stop"() : () -> ()
    %c0_20 = arith.constant 0 : index
    %c0_21 = arith.constant 0 : index
    %34 = vector.load %arg8[%c0_20, %c0_21] : memref<1x32xf32, #tpu.memory_space<vmem>>, vector<1x32xf32>
    %35 = vector.extract_strided_slice %33 {offsets = [0, 0, 0], sizes = [2, 1, 32], strides = [1, 1, 1]} : vector<2x2x32xf32> to vector<2x1x32xf32>
    %36 = vector.shape_cast %35 : vector<2x1x32xf32> to vector<2x32xf32>
    %c0_22 = arith.constant 0 : index
    %c0_23 = arith.constant 0 : index
    %37 = vector.load %arg7[%c0_22, %c0_23] : memref<64x32xf32, #tpu.memory_space<vmem>>, vector<32x32xf32>
    %cst_24 = arith.constant dense<0.000000e+00> : vector<2x32xf32>
    %38 = tpu.matmul %36, %37, %cst_24 {dimension_numbers = #tpu.dot_dimension_numbers<[1], [0], [0], [1], [0, 0, 1, 1], [], []>} : vector<2x32xf32>, vector<32x32xf32>, vector<2x32xf32> -> vector<2x32xf32>
    %39 = vector.broadcast %34 : vector<1x32xf32> to vector<2x32xf32>
    %40 = arith.addf %39, %38 : vector<2x32xf32>
    %41 = vector.extract_strided_slice %33 {offsets = [0, 1, 0], sizes = [2, 1, 32], strides = [1, 1, 1]} : vector<2x2x32xf32> to vector<2x1x32xf32>
    %42 = vector.shape_cast %41 : vector<2x1x32xf32> to vector<2x32xf32>
    %c32 = arith.constant 32 : index
    %c0_25 = arith.constant 0 : index
    %43 = vector.load %arg7[%c32, %c0_25] : memref<64x32xf32, #tpu.memory_space<vmem>>, vector<32x32xf32>
    %cst_26 = arith.constant dense<0.000000e+00> : vector<2x32xf32>
    %44 = tpu.matmul %42, %43, %cst_26 {dimension_numbers = #tpu.dot_dimension_numbers<[1], [0], [0], [1], [0, 0, 1, 1], [], []>} : vector<2x32xf32>, vector<32x32xf32>, vector<2x32xf32> -> vector<2x32xf32>
    %45 = arith.addf %40, %44 : vector<2x32xf32>
    %c0_27 = arith.constant 0 : index
    %c0_28 = arith.constant 0 : index
    %46 = vector.load %arg9[%c0_27, %c0_28] : memref<2x32xf32, #tpu.memory_space<vmem>>, vector<2x32xf32>
    tpu.vector_store %arg9[%c0_27, %c0_28], %45 {strides = array<i32>} : memref<2x32xf32, #tpu.memory_space<vmem>>, vector<2x32xf32>,
    return
  }
  func.func @transform_0(%arg0: i32) -> (i32, i32, i32) {
    %c0_i32 = arith.constant 0 : i32
    %c0_i32_0 = arith.constant 0 : i32
    %c0_i32_1 = arith.constant 0 : i32
    return %arg0, %c0_i32, %c0_i32_0 : i32, i32, i32
  }
  func.func @transform_1(%arg0: i32) -> (i32, i32, i32) {
    %c0_i32 = arith.constant 0 : i32
    %c0_i32_0 = arith.constant 0 : i32
    %c0_i32_1 = arith.constant 0 : i32
    return %arg0, %c0_i32, %c0_i32_0 : i32, i32, i32
  }
  func.func @transform_2(%arg0: i32) -> (i32, i32) {
    %c0_i32 = arith.constant 0 : i32
    %c0_i32_0 = arith.constant 0 : i32
    %c0_i32_1 = arith.constant 0 : i32
    return %c0_i32, %c0_i32_0 : i32, i32
  }
  func.func @transform_3(%arg0: i32) -> (i32, i32) {
    %c0_i32 = arith.constant 0 : i32
    %c0_i32_0 = arith.constant 0 : i32
    %c0_i32_1 = arith.constant 0 : i32
    return %c0_i32, %c0_i32_0 : i32, i32
  }
  func.func @transform_4(%arg0: i32) -> (i32, i32) {
    %c0_i32 = arith.constant 0 : i32
    %c0_i32_0 = arith.constant 0 : i32
    %c0_i32_1 = arith.constant 0 : i32
    return %c0_i32, %c0_i32_0 : i32, i32
  }
  func.func @transform_5(%arg0: i32) -> (i32, i32) {
    %c0_i32 = arith.constant 0 : i32
    %c0_i32_0 = arith.constant 0 : i32
    %c0_i32_1 = arith.constant 0 : i32
    return %c0_i32, %c0_i32_0 : i32, i32
  }
  func.func @transform_6(%arg0: i32) -> (i32, i32) {
    %c0_i32 = arith.constant 0 : i32
    %c0_i32_0 = arith.constant 0 : i32
    %c0_i32_1 = arith.constant 0 : i32
    return %c0_i32, %c0_i32_0 : i32, i32
  }
  func.func @transform_7(%arg0: i32) -> (i32, i32) {
    %c0_i32 = arith.constant 0 : i32
    %c0_i32_0 = arith.constant 0 : i32
    %c0_i32_1 = arith.constant 0 : i32
    return %c0_i32, %c0_i32_0 : i32, i32
  }
  func.func @transform_8(%arg0: i32) -> (i32, i32) {
    %c0_i32 = arith.constant 0 : i32
    %c0_i32_0 = arith.constant 0 : i32
    return %arg0, %c0_i32 : i32, i32
  }
}

</mosaic_0001>

<bundles_post_ra>
// kernel: tpu_custom_call.1
= control target key start
LH: loop header
LB: loop body
LE: loop exit
PB: predicated region body
PF: predicated region fallthrough
CT: control target
= control target key end

     0   :  { %vm43_vm0 = vcmask 261120   ;;  %s945_s0 = inlined_call_operand.vmem [shape: f32[2,8,32], index: 0, kind: input, shape index: {}]   ;;  %s946_s1 = inlined_call_operand.vmem [shape: f32[2,8], index: 1, kind: input, shape index: {}]   ;;  %s947_s2 = inlined_call_operand.vmem [shape: f32[32,32], index: 2, kind: input, shape index: {}]   ;;  %s948_s3 = inlined_call_operand.vmem [shape: f32[1,32], index: 3, kind: input, shape index: {}]   ;;  %s949_s4 = inlined_call_operand.vmem [shape: f32[32,2], index: 4, kind: input, shape index: {}]   ;;  %s950_s5 = inlined_call_operand.vmem [shape: f32[1,2], index: 5, kind: input, shape index: {}]   ;;  %s951_s6 = inlined_call_operand.vmem [shape: f32[64,32], index: 6, kind: input, shape index: {}]   ;;  %s952_s7 = inlined_call_operand.vmem [shape: f32[1,32], index: 7, kind: input, shape index: {}]   ;;  %s953_s8 = inlined_call_operand.hbm [shape: f32[2,32], index: 8, kind: output, shape index: {}]  }
   0x1   :  { %v35_v0 = vld [vmem:[%s947_s2 + $0x18] sm:$0xff]  ;;  %v34_v1 = vld [vmem:[%s947_s2 + $0x10] sm:$0xff]  ;;  %v30_v2 = vld [vmem:[%s945_s0] sm:$0xff] }
   0x2   :  { %713 = vmatprep.subr.mxu0 %v35_v0  ;;  %v33_v3 = vld [vmem:[%s947_s2 + $0x8] sm:$0xff]  ;;  %721 = vmatprep.mubr.msk.f32.mxu0 %vm43_vm0, %v30_v2 }
   0x3   :  { %714 = vmatpush3.msra.mxu0 %v35_v0 }
   0x4   :  { %13 = vsyncpa [#allocation3], 0  ;;  %715 = vmatprep.subr.mxu0 %v34_v1  ;;  %v32_v4 = vld [vmem:[%s947_s2] sm:$0xff]  ;;  %v31_v5 = vld [vmem:[%s945_s0 + $0x8] sm:$0xff]  ;;  %v220_v10 = vlaneseq  ;;  %v800_v24 = vmov 0.0   ;;  %vm801_vm1 = vmmov 0  }
   0x5   :  { %716 = vmatpush3.msra.mxu0 %v34_v1  ;;  %v130_v6 = vld [vmem:[%s949_s4 + $0x18] sm:$0xff]  ;;  %v129_v7 = vld [vmem:[%s949_s4 + $0x10] sm:$0xff]  ;;  %v128_v8 = vld [vmem:[%s949_s4 + $0x8] sm:$0xff]  ;;  %vm242_vm3 = vcmask 15360   ;;  %vm345_vm5 = vcmask 64512   ;;  %vm500_vm6 = vcmask 1041409  }
   0x6   :  { %717 = vmatprep.subr.mxu0 %v33_v3  ;;  %724 = vmatprep.subr.mxu1 %v130_v6  ;;  %v127_v9 = vld [vmem:[%s949_s4] sm:$0xff]  ;;  %v221_v11 = vshrl.u32 %v220_v10, 7  ;;  %vm660_vm7 = vcmask 254976  }
   0x7   :  { %718 = vmatpush3.msra.mxu0 %v33_v3  ;;  %725 = vmatpush3.msra.mxu1 %v130_v6  ;;  %v219_v12 = vld [vmem:[%s946_s1] sm:$0x3] }
   0x8   :  { %719 = vmatprep.subr.mxu0 %v32_v4  ;;  %726 = vmatprep.subr.mxu1 %v129_v7  ;;  %v229_v13 = vsub.s32 1, %v221_v11  ;;  %v222_v14 = vsub.s32 0, %v221_v11  ;;  %v676_v17 = vld [vmem:[%s948_s3] ss:$0 sm:$0xff]  ;;  %v495_v11 = vld [vmem:[%s951_s6 + $0x10] sm:$0xff] }
   0x9   :  { %720 = vmatpush3.msra.mxu0 %v32_v4  ;;  %727 = vmatpush3.msra.mxu1 %v129_v7  ;;  %v679_v26 = vld [vmem:[%s950_s5] ss:$0 sm:$0xff] }
   0xa   :  { %722 = vmatmul.mubr.msk.f32.vlgmr.msra.gmra.mxu0 %vm43_vm0, %v31_v5  ;;  %728 = vmatprep.subr.mxu1 %v128_v8  ;;  %v230_v15 = vrot.slane %v219_v12, %v229_v13  ;;  %v223_v16 = vrot.slane %v219_v12, %v222_v14  ;;  %v584_v12 = vld [vmem:[%s951_s6 + $0x38] sm:$0xff]  ;;  %v494_v13 = vld [vmem:[%s951_s6 + $0x8] sm:$0xff]  ;;  %v583_v14 = vld [vmem:[%s951_s6 + $0x30] sm:$0xff] }
   0xb   :  { %729 = vmatpush3.msra.mxu1 %v128_v8  ;;  %735 = vmatprep.subr.mxu0 %v800_v24 }
   0xc   :  { %730 = vmatprep.subr.mxu1 %v127_v9  ;;  %232 = vbcast.lane.b32.xlu0 %v230_v15, 256  ;;  %v493_v15 = vld [vmem:[%s951_s6] sm:$0xff] }
   0xd   :  { %731 = vmatpush3.msra.mxu1 %v127_v9  ;;  %736 = vmatpush3.msra.mxu0 %v30_v2  ;;  %v496_v9 = vld [vmem:[%s951_s6 + $0x18] sm:$0xff] }
   0xe   :  { %740 = vmatprep.subr.mxu1 %v800_v24  ;;  %737 = vmatprep.mubr.msk.f32.mxu0 %vm801_vm1, %v800_v24 }
   0xf   :  { %745 = vmatprep.subr.mxu0 %v800_v24 }
  0x10   :  { %225 = vbcast.lane.b32.xlu0 %v223_v16, 256  ;;  %v582_v16 = vld [vmem:[%s951_s6 + $0x28] sm:$0xff] }
  0x7e   :  { %v233_v25 = vpop.permute.xlu0 %232 }
  0x7f   :  { %vm235_vm2 = vcmp.gt.f32.partialorder %v233_v25, 0.0 }
  0x82   :  { %v226_v27 = vpop.permute.xlu0 %225 }
  0x83   :  { %vm234_vm4 = vcmp.gt.f32.partialorder %v226_v27, 0.0 }
  0xca   :  { %v723_v18 = vpop.f32.mrf.mxu0 }
  0xcb   :  { %v122_v19 = vadd.f32 %v723_v18, %v676_v17 }
  0xcc   :  { %v116_v20 = vpop.f32.mrf.mxu0 }
  0xcd   :  { %v117_v21 = vadd.f32 %v676_v17, %v116_v20  ;;  %v126_v23 = vmax.f32 %v122_v19, 0.0  ;;  %v581_v17 = vld [vmem:[%s951_s6 + $0x20] sm:$0xff]  ;;  %s802_s6 = smov [#allocation2]  }
  0xce   :  { %s668_s2 = sshll.u32 %s802_s6, 4  ;;  %s669_s2 = int_to_ptr.vmem [resolvable:$true] %s668_s2 }
  0xcf   :  { %v125_v22 = vmax.f32 %v117_v21, 0.0  ;;  %s778_s21 = scalar_lea.vmem %s669_s2, 32  ;;  %p783_p1 = scmp.lt.s32.totalorder %s669_s2, %s669_s2 }
  0xd0   :  { %p779_p0 = scmp.ne.s32.totalorder %s669_s2, %s778_s21  ;;  %p784_p2 = scmp.lt.s32.totalorder %s778_s21, %s778_s21 }
  0xd1   :  { %732 = vmatprep.mubr.msk.f32.mxu1 %vm43_vm0, %v125_v22 }
  0xd2   :  { %733 = vmatmul.mubr.msk.f32.vlgmr.msra.gmra.mxu1 %vm43_vm0, %v126_v23  ;;  %p785_p3 = por %p784_p2, %p783_p1 }
  0xd3   :  { %741 = vmatpush3.msra.mxu1 %v31_v5  ;;  %742 = vmatprep.mubr.msk.f32.mxu1 %vm801_vm1, %v800_v24 }
  0xd4   :  { %756 = vmatprep.subr.mxu1 %v800_v24  ;;  %p786_p4 = pnand %p785_p3, %p779_p0 }
 0x192   :  { %v734_v28 = vpop.f32.mrf.mxu1 }
 0x193   :  { %v216_v29 = vadd.f32 %v734_v28, %v679_v26 }
 0x194   :  { %v210_v30 = vpop.f32.mrf.mxu1 }
 0x195   :  { %v241_v31 = vsel %vm235_vm2, -1e+09, %v216_v29  ;;  %v211_v32 = vadd.f32 %v679_v26, %v210_v30 }
 0x196   :  { %v250_v33 = vsel %vm242_vm3, %v241_v31, -inf }
 0x197   :  { %v251_v34 = vrot.slane %v250_v33, 4  ;;  %v240_v35 = vsel %vm234_vm4, -1e+09, %v211_v32 }
 0x198   :  { %v243_v36 = vsel %vm242_vm3, %v240_v35, -inf }
 0x199   :  { %v252_v37 = vmax.f32 %v250_v33, %v251_v34  ;;  %v244_v38 = vrot.slane %v243_v36, 4 }
 0x19b   :  { %v253_v39 = vrot.slane %v252_v37, 2  ;;  %v245_v40 = vmax.f32 %v243_v36, %v244_v38 }
 0x19d   :  { %v254_v41 = vmax.f32 %v252_v37, %v253_v39  ;;  %v246_v42 = vrot.slane %v245_v40, 2 }
 0x19f   :  { %v255_v43 = vrot.slane %v254_v41, 1  ;;  %v247_v44 = vmax.f32 %v245_v40, %v246_v42 }
 0x1a1   :  { %v256_v45 = vmax.f32 %v254_v41, %v255_v43  ;;  %v248_v46 = vrot.slane %v247_v44, 1 }
 0x1a3   :  { %v258_v47 = vsub.f32 %v241_v31, %v256_v45  ;;  %v249_v48 = vmax.f32 %v247_v44, %v248_v46 }
 0x1a5   :  { %v261_v49 = vmul.f32 1.442695, %v258_v47  ;;  %v257_v50 = vsub.f32 %v240_v35, %v249_v48 }
 0x1a7   :  { %770 = vpow2.f32 %v261_v49  ;;  %v259_v51 = vmul.f32 1.442695, %v257_v50 }
 0x1a9   :  { %772 = vpow2.f32 %v259_v51 }
 0x1b4   :  { %v771_v52 = vpop.eup %770 }
 0x1b5   :  { %v270_v53 = vsel %vm242_vm3, %v771_v52, 0.0 }
 0x1b6   :  { %v773_v54 = vpop.eup %772  ;;  %v271_v55 = vrot.slane %v270_v53, 4 }
 0x1b7   :  { %v263_v56 = vsel %vm242_vm3, %v773_v54, 0.0 }
 0x1b8   :  { %v272_v57 = vadd.f32 %v271_v55, %v270_v53  ;;  %v264_v58 = vrot.slane %v263_v56, 4 }
 0x1ba   :  { %v273_v59 = vrot.slane %v272_v57, 2  ;;  %v265_v60 = vadd.f32 %v264_v58, %v263_v56 }
 0x1bc   :  { %v274_v61 = vadd.f32 %v273_v59, %v272_v57  ;;  %v266_v62 = vrot.slane %v265_v60, 2 }
 0x1be   :  { %v275_v63 = vrot.slane %v274_v61, 1  ;;  %v267_v0 = vadd.f32 %v266_v62, %v265_v60 }
 0x1c0   :  { %v276_v1 = vadd.f32 %v275_v63, %v274_v61  ;;  %v268_v2 = vrot.slane %v267_v0, 1 }
 0x1c2   :  { %774 = vrcp.f32 %v276_v1  ;;  %v269_v3 = vadd.f32 %v268_v2, %v267_v0 }
 0x1c4   :  { %776 = vrcp.f32 %v269_v3 }
 0x1cf   :  { %v775_v4 = vpop.eup %774 }
 0x1d0   :  { %v280_v5 = vmul.f32 %v775_v4, %v771_v52 }
 0x1d1   :  { %v777_v6 = vpop.eup %776 }
 0x1d2   :  { %313 = vxpose.xlu1.b32.start.end [1/1] (short) (narrow) %v280_v5, 8  ;;  %v279_v7 = vmul.f32 %v777_v6, %v773_v54 }
 0x1d6   :  { %281 = vxpose.xlu1.b32.start.end [1/1] (short) (narrow) %v279_v7, 8 }
 0x24e   :  { %v329_v8 = vpop.trf.xlu1 }
 0x24f   :  { %743 = vmatmul.mubr.msk.f32.vlgmr.msra.gmra.mxu1 %vm345_vm5, %v329_v8 }
 0x250   :  { %764 = vmatprep.mubr.msk.f32.mxu1 %vm801_vm1, %v800_v24  ;;  %757 = vmatpush3.msra.mxu1 %v584_v12 }
 0x251   :  { %758 = vmatprep.subr.mxu1 %v800_v24 }
 0x252   :  { %v297_v10 = vpop.trf.xlu1  ;;  %759 = vmatpush3.msra.mxu1 %v583_v14 }
 0x253   :  { %738 = vmatmul.mubr.msk.f32.vlgmr.msra.gmra.mxu0 %vm345_vm5, %v297_v10  ;;  %760 = vmatprep.subr.mxu1 %v800_v24 }
 0x254   :  { %746 = vmatpush3.msra.mxu0 %v496_v9  ;;  %753 = vmatprep.mubr.msk.f32.mxu0 %vm801_vm1, %v800_v24 }
 0x255   :  { %747 = vmatprep.subr.mxu0 %v800_v24  ;;  %761 = vmatpush3.msra.mxu1 %v582_v16 }
 0x256   :  { %748 = vmatpush3.msra.mxu0 %v495_v11  ;;  %762 = vmatprep.subr.mxu1 %v800_v24 }
 0x257   :  { %749 = vmatprep.subr.mxu0 %v800_v24  ;;  %763 = vmatpush3.msra.mxu1 %v581_v17 }
 0x258   :  { %750 = vmatpush3.msra.mxu0 %v494_v13 }
 0x259   :  { %751 = vmatprep.subr.mxu0 %v800_v24  ;;  %v685_v24 = vld [vmem:[%s952_s7] ss:$0 sm:$0xff] }
 0x25a   :  { %752 = vmatpush3.msra.mxu0 %v493_v15 }
 0x30f   :  { %v488_v18 = vpop.f32.mrf.mxu1 }
 0x310   :  { %v499_v20 = vrot.slane %v488_v18, 7 }
 0x311   :  { %v744_v19 = vpop.f32.mrf.mxu1 }
 0x313   :  { %v415_v21 = vpop.f32.mrf.mxu0 }
 0x314   :  { %v501_v22 = vsel %vm500_vm6, %v499_v20, %v415_v21  ;;  %v585_v23 = vrot.slane %v415_v21, 1 }
 0x315   :  { %v739_v25 = vpop.f32.mrf.mxu0  ;;  %754 = vmatmul.mubr.msk.f32.vlgmr.msra.gmra.mxu0 %vm43_vm0, %v501_v22 }
 0x316   :  { %v586_v26 = vsel %vm500_vm6, %v488_v18, %v585_v23 }
 0x317   :  { %765 = vmatmul.mubr.msk.f32.vlgmr.msra.gmra.mxu1 %vm43_vm0, %v586_v26 }
 0x3d5   :  { %v570_v27 = vpop.f32.mrf.mxu0 }
 0x3d6   :  { %v580_v28 = vadd.f32 %v685_v24, %v570_v27 }
 0x3d7   :  { %v755_v29 = vpop.f32.mrf.mxu0  ;;  %v655_v30 = vpop.f32.mrf.mxu1 }
 0x3d8   :  { %v659_v31 = vadd.f32 %v655_v30, %v580_v28 }
 0x3d9   :  { %v766_v32 = vpop.f32.mrf.mxu1 }
 0x3da   :  { %661 = vst.msk [vmem:[#allocation2] sm:$0x3] %vm660_vm7, %v659_v31 }
 0x3db   :  { %789 = shalt.err (!%p786_p4)
}
 0x3dc   :  { %671 = dma.vmem_to_hbm [thread:$0]  %s669_s2, 32, %s953_s8, [#allocation3]  }
 0x3dd   :  { %798 = dma.done.wait [#allocation3], 32  }
 0x3de   :  { %799 = vsyncadd [#allocation3], 4294967264 }
 0x3df   :  { %675 = vsyncpa [#allocation3], 1 }

// kernel: tpu_custom_call.1
= control target key start
LH: loop header
LB: loop body
LE: loop exit
PB: predicated region body
PF: predicated region fallthrough
CT: control target
= control target key end

     0   :  { %vm43_vm0 = vcmask 261120   ;;  %s945_s0 = inlined_call_operand.vmem [shape: f32[2,8,32], index: 0, kind: input, shape index: {}]   ;;  %s946_s1 = inlined_call_operand.vmem [shape: f32[2,8], index: 1, kind: input, shape index: {}]   ;;  %s947_s2 = inlined_call_operand.vmem [shape: f32[32,32], index: 2, kind: input, shape index: {}]   ;;  %s948_s3 = inlined_call_operand.vmem [shape: f32[1,32], index: 3, kind: input, shape index: {}]   ;;  %s949_s4 = inlined_call_operand.vmem [shape: f32[32,2], index: 4, kind: input, shape index: {}]   ;;  %s950_s5 = inlined_call_operand.vmem [shape: f32[1,2], index: 5, kind: input, shape index: {}]   ;;  %s951_s6 = inlined_call_operand.vmem [shape: f32[64,32], index: 6, kind: input, shape index: {}]   ;;  %s952_s7 = inlined_call_operand.vmem [shape: f32[1,32], index: 7, kind: input, shape index: {}]   ;;  %s953_s8 = inlined_call_operand.hbm [shape: f32[2,32], index: 8, kind: output, shape index: {}]  }
   0x1   :  { %v35_v0 = vld [vmem:[%s947_s2 + $0x18] sm:$0xff]  ;;  %v34_v1 = vld [vmem:[%s947_s2 + $0x10] sm:$0xff]  ;;  %v30_v2 = vld [vmem:[%s945_s0] sm:$0xff] }
   0x2   :  { %713 = vmatprep.subr.mxu0 %v35_v0  ;;  %v33_v3 = vld [vmem:[%s947_s2 + $0x8] sm:$0xff]  ;;  %721 = vmatprep.mubr.msk.f32.mxu0 %vm43_vm0, %v30_v2 }
   0x3   :  { %714 = vmatpush3.msra.mxu0 %v35_v0 }
   0x4   :  { %13 = vsyncpa [#allocation3], 0  ;;  %715 = vmatprep.subr.mxu0 %v34_v1  ;;  %v32_v4 = vld [vmem:[%s947_s2] sm:$0xff]  ;;  %v31_v5 = vld [vmem:[%s945_s0 + $0x8] sm:$0xff]  ;;  %v220_v10 = vlaneseq  ;;  %v800_v24 = vmov 0.0   ;;  %vm801_vm1 = vmmov 0  }
   0x5   :  { %716 = vmatpush3.msra.mxu0 %v34_v1  ;;  %v130_v6 = vld [vmem:[%s949_s4 + $0x18] sm:$0xff]  ;;  %v129_v7 = vld [vmem:[%s949_s4 + $0x10] sm:$0xff]  ;;  %v128_v8 = vld [vmem:[%s949_s4 + $0x8] sm:$0xff]  ;;  %vm242_vm3 = vcmask 15360   ;;  %vm345_vm5 = vcmask 64512   ;;  %vm500_vm6 = vcmask 1041409  }
   0x6   :  { %717 = vmatprep.subr.mxu0 %v33_v3  ;;  %724 = vmatprep.subr.mxu1 %v130_v6  ;;  %v127_v9 = vld [vmem:[%s949_s4] sm:$0xff]  ;;  %v221_v11 = vshrl.u32 %v220_v10, 7  ;;  %vm660_vm7 = vcmask 254976  }
   0x7   :  { %718 = vmatpush3.msra.mxu0 %v33_v3  ;;  %725 = vmatpush3.msra.mxu1 %v130_v6  ;;  %v219_v12 = vld [vmem:[%s946_s1] sm:$0x3] }
   0x8   :  { %719 = vmatprep.subr.mxu0 %v32_v4  ;;  %726 = vmatprep.subr.mxu1 %v129_v7  ;;  %v229_v13 = vsub.s32 1, %v221_v11  ;;  %v222_v14 = vsub.s32 0, %v221_v11  ;;  %v676_v17 = vld [vmem:[%s948_s3] ss:$0 sm:$0xff]  ;;  %v495_v11 = vld [vmem:[%s951_s6 + $0x10] sm:$0xff] }
   0x9   :  { %720 = vmatpush3.msra.mxu0 %v32_v4  ;;  %727 = vmatpush3.msra.mxu1 %v129_v7  ;;  %v679_v26 = vld [vmem:[%s950_s5] ss:$0 sm:$0xff] }
   0xa   :  { %722 = vmatmul.mubr.msk.f32.vlgmr.msra.gmra.mxu0 %vm43_vm0, %v31_v5  ;;  %728 = vmatprep.subr.mxu1 %v128_v8  ;;  %v230_v15 = vrot.slane %v219_v12, %v229_v13  ;;  %v223_v16 = vrot.slane %v219_v12, %v222_v14  ;;  %v584_v12 = vld [vmem:[%s951_s6 + $0x38] sm:$0xff]  ;;  %v494_v13 = vld [vmem:[%s951_s6 + $0x8] sm:$0xff]  ;;  %v583_v14 = vld [vmem:[%s951_s6 + $0x30] sm:$0xff] }
   0xb   :  { %729 = vmatpush3.msra.mxu1 %v128_v8  ;;  %735 = vmatprep.subr.mxu0 %v800_v24 }
   0xc   :  { %730 = vmatprep.subr.mxu1 %v127_v9  ;;  %232 = vbcast.lane.b32.xlu0 %v230_v15, 256  ;;  %v493_v15 = vld [vmem:[%s951_s6] sm:$0xff] }
   0xd   :  { %731 = vmatpush3.msra.mxu1 %v127_v9  ;;  %736 = vmatpush3.msra.mxu0 %v30_v2  ;;  %v496_v9 = vld [vmem:[%s951_s6 + $0x18] sm:$0xff] }
   0xe   :  { %740 = vmatprep.subr.mxu1 %v800_v24  ;;  %737 = vmatprep.mubr.msk.f32.mxu0 %vm801_vm1, %v800_v24 }
   0xf   :  { %745 = vmatprep.subr.mxu0 %v800_v24 }
  0x10   :  { %225 = vbcast.lane.b32.xlu0 %v223_v16, 256  ;;  %v582_v16 = vld [vmem:[%s951_s6 + $0x28] sm:$0xff] }
  0x7e   :  { %v233_v25 = vpop.permute.xlu0 %232 }
  0x7f   :  { %vm235_vm2 = vcmp.gt.f32.partialorder %v233_v25, 0.0 }
  0x82   :  { %v226_v27 = vpop.permute.xlu0 %225 }
  0x83   :  { %vm234_vm4 = vcmp.gt.f32.partialorder %v226_v27, 0.0 }
  0xca   :  { %v723_v18 = vpop.f32.mrf.mxu0 }
  0xcb   :  { %v122_v19 = vadd.f32 %v723_v18, %v676_v17 }
  0xcc   :  { %v116_v20 = vpop.f32.mrf.mxu0 }
  0xcd   :  { %v117_v21 = vadd.f32 %v676_v17, %v116_v20  ;;  %v126_v23 = vmax.f32 %v122_v19, 0.0  ;;  %v581_v17 = vld [vmem:[%s951_s6 + $0x20] sm:$0xff]  ;;  %s802_s6 = smov [#allocation2]  }
  0xce   :  { %s668_s2 = sshll.u32 %s802_s6, 4  ;;  %s669_s2 = int_to_ptr.vmem [resolvable:$true] %s668_s2 }
  0xcf   :  { %v125_v22 = vmax.f32 %v117_v21, 0.0  ;;  %s778_s21 = scalar_lea.vmem %s669_s2, 32  ;;  %p783_p1 = scmp.lt.s32.totalorder %s669_s2, %s669_s2 }
  0xd0   :  { %p779_p0 = scmp.ne.s32.totalorder %s669_s2, %s778_s21  ;;  %p784_p2 = scmp.lt.s32.totalorder %s778_s21, %s778_s21 }
  0xd1   :  { %732 = vmatprep.mubr.msk.f32.mxu1 %vm43_vm0, %v125_v22 }
  0xd2   :  { %733 = vmatmul.mubr.msk.f32.vlgmr.msra.gmra.mxu1 %vm43_vm0, %v126_v23  ;;  %p785_p3 = por %p784_p2, %p783_p1 }
  0xd3   :  { %741 = vmatpush3.msra.mxu1 %v31_v5  ;;  %742 = vmatprep.mubr.msk.f32.mxu1 %vm801_vm1, %v800_v24 }
  0xd4   :  { %756 = vmatprep.subr.mxu1 %v800_v24  ;;  %p786_p4 = pnand %p785_p3, %p779_p0 }
 0x192   :  { %v734_v28 = vpop.f32.mrf.mxu1 }
 0x193   :  { %v216_v29 = vadd.f32 %v734_v28, %v679_v26 }
 0x194   :  { %v210_v30 = vpop.f32.mrf.mxu1 }
 0x195   :  { %v241_v31 = vsel %vm235_vm2, -1e+09, %v216_v29  ;;  %v211_v32 = vadd.f32 %v679_v26, %v210_v30 }
 0x196   :  { %v250_v33 = vsel %vm242_vm3, %v241_v31, -inf }
 0x197   :  { %v251_v34 = vrot.slane %v250_v33, 4  ;;  %v240_v35 = vsel %vm234_vm4, -1e+09, %v211_v32 }
 0x198   :  { %v243_v36 = vsel %vm242_vm3, %v240_v35, -inf }
 0x199   :  { %v252_v37 = vmax.f32 %v250_v33, %v251_v34  ;;  %v244_v38 = vrot.slane %v243_v36, 4 }
 0x19b   :  { %v253_v39 = vrot.slane %v252_v37, 2  ;;  %v245_v40 = vmax.f32 %v243_v36, %v244_v38 }
 0x19d   :  { %v254_v41 = vmax.f32 %v252_v37, %v253_v39  ;;  %v246_v42 = vrot.slane %v245_v40, 2 }
 0x19f   :  { %v255_v43 = vrot.slane %v254_v41, 1  ;;  %v247_v44 = vmax.f32 %v245_v40, %v246_v42 }
 0x1a1   :  { %v256_v45 = vmax.f32 %v254_v41, %v255_v43  ;;  %v248_v46 = vrot.slane %v247_v44, 1 }
 0x1a3   :  { %v258_v47 = vsub.f32 %v241_v31, %v256_v45  ;;  %v249_v48 = vmax.f32 %v247_v44, %v248_v46 }
 0x1a5   :  { %v261_v49 = vmul.f32 1.442695, %v258_v47  ;;  %v257_v50 = vsub.f32 %v240_v35, %v249_v48 }
 0x1a7   :  { %770 = vpow2.f32 %v261_v49  ;;  %v259_v51 = vmul.f32 1.442695, %v257_v50 }
 0x1a9   :  { %772 = vpow2.f32 %v259_v51 }
 0x1b4   :  { %v771_v52 = vpop.eup %770 }
 0x1b5   :  { %v270_v53 = vsel %vm242_vm3, %v771_v52, 0.0 }
 0x1b6   :  { %v773_v54 = vpop.eup %772  ;;  %v271_v55 = vrot.slane %v270_v53, 4 }
 0x1b7   :  { %v263_v56 = vsel %vm242_vm3, %v773_v54, 0.0 }
 0x1b8   :  { %v272_v57 = vadd.f32 %v271_v55, %v270_v53  ;;  %v264_v58 = vrot.slane %v263_v56, 4 }
 0x1ba   :  { %v273_v59 = vrot.slane %v272_v57, 2  ;;  %v265_v60 = vadd.f32 %v264_v58, %v263_v56 }
 0x1bc   :  { %v274_v61 = vadd.f32 %v273_v59, %v272_v57  ;;  %v266_v62 = vrot.slane %v265_v60, 2 }
 0x1be   :  { %v275_v63 = vrot.slane %v274_v61, 1  ;;  %v267_v0 = vadd.f32 %v266_v62, %v265_v60 }
 0x1c0   :  { %v276_v1 = vadd.f32 %v275_v63, %v274_v61  ;;  %v268_v2 = vrot.slane %v267_v0, 1 }
 0x1c2   :  { %774 = vrcp.f32 %v276_v1  ;;  %v269_v3 = vadd.f32 %v268_v2, %v267_v0 }
 0x1c4   :  { %776 = vrcp.f32 %v269_v3 }
 0x1cf   :  { %v775_v4 = vpop.eup %774 }
 0x1d0   :  { %v280_v5 = vmul.f32 %v775_v4, %v771_v52 }
 0x1d1   :  { %v777_v6 = vpop.eup %776 }
 0x1d2   :  { %313 = vxpose.xlu1.b32.start.end [1/1] (short) (narrow) %v280_v5, 8  ;;  %v279_v7 = vmul.f32 %v777_v6, %v773_v54 }
 0x1d6   :  { %281 = vxpose.xlu1.b32.start.end [1/1] (short) (narrow) %v279_v7, 8 }
 0x24e   :  { %v329_v8 = vpop.trf.xlu1 }
 0x24f   :  { %743 = vmatmul.mubr.msk.f32.vlgmr.msra.gmra.mxu1 %vm345_vm5, %v329_v8 }
 0x250   :  { %764 = vmatprep.mubr.msk.f32.mxu1 %vm801_vm1, %v800_v24  ;;  %757 = vmatpush3.msra.mxu1 %v584_v12 }
 0x251   :  { %758 = vmatprep.subr.mxu1 %v800_v24 }
 0x252   :  { %v297_v10 = vpop.trf.xlu1  ;;  %759 = vmatpush3.msra.mxu1 %v583_v14 }
 0x253   :  { %738 = vmatmul.mubr.msk.f32.vlgmr.msra.gmra.mxu0 %vm345_vm5, %v297_v10  ;;  %760 = vmatprep.subr.mxu1 %v800_v24 }
 0x254   :  { %746 = vmatpush3.msra.mxu0 %v496_v9  ;;  %753 = vmatprep.mubr.msk.f32.mxu0 %vm801_vm1, %v800_v24 }
 0x255   :  { %747 = vmatprep.subr.mxu0 %v800_v24  ;;  %761 = vmatpush3.msra.mxu1 %v582_v16 }
 0x256   :  { %748 = vmatpush3.msra.mxu0 %v495_v11  ;;  %762 = vmatprep.subr.mxu1 %v800_v24 }
 0x257   :  { %749 = vmatprep.subr.mxu0 %v800_v24  ;;  %763 = vmatpush3.msra.mxu1 %v581_v17 }
 0x258   :  { %750 = vmatpush3.msra.mxu0 %v494_v13 }
 0x259   :  { %751 = vmatprep.subr.mxu0 %v800_v24  ;;  %v685_v24 = vld [vmem:[%s952_s7] ss:$0 sm:$0xff] }
 0x25a   :  { %752 = vmatpush3.msra.mxu0 %v493_v15 }
 0x30f   :  { %v488_v18 = vpop.f32.mrf.mxu1 }
 0x310   :  { %v499_v20 = vrot.slane %v488_v18, 7 }
 0x311   :  { %v744_v19 = vpop.f32.mrf.mxu1 }
 0x313   :  { %v415_v21 = vpop.f32.mrf.mxu0 }
 0x314   :  { %v501_v22 = vsel %vm500_vm6, %v499_v20, %v415_v21  ;;  %v585_v23 = vrot.slane %v415_v21, 1 }
 0x315   :  { %v739_v25 = vpop.f32.mrf.mxu0  ;;  %754 = vmatmul.mubr.msk.f32.vlgmr.msra.gmra.mxu0 %vm43_vm0, %v501_v22 }
 0x316   :  { %v586_v26 = vsel %vm500_vm6, %v488_v18, %v585_v23 }
 0x317   :  { %765 = vmatmul.mubr.msk.f32.vlgmr.msra.gmra.mxu1 %vm43_vm0, %v586_v26 }
 0x3d5   :  { %v570_v27 = vpop.f32.mrf.mxu0 }
 0x3d6   :  { %v580_v28 = vadd.f32 %v685_v24, %v570_v27 }
 0x3d7   :  { %v755_v29 = vpop.f32.mrf.mxu0  ;;  %v655_v30 = vpop.f32.mrf.mxu1 }
 0x3d8   :  { %v659_v31 = vadd.f32 %v655_v30, %v580_v28 }
 0x3d9   :  { %v766_v32 = vpop.f32.mrf.mxu1 }
 0x3da   :  { %661 = vst.msk [vmem:[#allocation2] sm:$0x3] %vm660_vm7, %v659_v31 }
 0x3db   :  { %789 = shalt.err (!%p786_p4)
}
 0x3dc   :  { %671 = dma.vmem_to_hbm [thread:$0]  %s669_s2, 32, %s953_s8, [#allocation3]  }
 0x3dd   :  { %798 = dma.done.wait [#allocation3], 32  }
 0x3de   :  { %799 = vsyncadd [#allocation3], 4294967264 }
 0x3df   :  { %675 = vsyncpa [#allocation3], 1 }

// kernel: tpu_custom_call.1
= control target key start
LH: loop header
LB: loop body
LE: loop exit
PB: predicated region body
PF: predicated region fallthrough
CT: control target
= control target key end

     0   :  { %vm43_vm0 = vcmask 261120   ;;  %s944_s0 = inlined_call_operand.vmem [shape: f32[2,8,32], index: 0, kind: input, shape index: {}]   ;;  %s945_s1 = inlined_call_operand.vmem [shape: f32[2,8,1], index: 1, kind: input, shape index: {}]   ;;  %s946_s2 = inlined_call_operand.vmem [shape: f32[32,32], index: 2, kind: input, shape index: {}]   ;;  %s947_s3 = inlined_call_operand.vmem [shape: f32[1,32], index: 3, kind: input, shape index: {}]   ;;  %s948_s4 = inlined_call_operand.vmem [shape: f32[32,2], index: 4, kind: input, shape index: {}]   ;;  %s949_s5 = inlined_call_operand.vmem [shape: f32[1,2], index: 5, kind: input, shape index: {}]   ;;  %s950_s6 = inlined_call_operand.vmem [shape: f32[64,32], index: 6, kind: input, shape index: {}]   ;;  %s951_s7 = inlined_call_operand.vmem [shape: f32[1,32], index: 7, kind: input, shape index: {}]   ;;  %s952_s8 = inlined_call_operand.hbm [shape: f32[2,32], index: 8, kind: output, shape index: {}]  }
   0x1   :  { %v35_v0 = vld [vmem:[%s946_s2 + $0x18] sm:$0xff]  ;;  %v34_v1 = vld [vmem:[%s946_s2 + $0x10] sm:$0xff]  ;;  %v30_v2 = vld [vmem:[%s944_s0] sm:$0xff] }
   0x2   :  { %706 = vmatprep.subr.mxu0 %v35_v0  ;;  %v33_v3 = vld [vmem:[%s946_s2 + $0x8] sm:$0xff]  ;;  %714 = vmatprep.mubr.msk.f32.mxu0 %vm43_vm0, %v30_v2 }
   0x3   :  { %707 = vmatpush3.msra.mxu0 %v35_v0 }
   0x4   :  { %13 = vsyncpa [#allocation3], 0  ;;  %708 = vmatprep.subr.mxu0 %v34_v1  ;;  %v32_v4 = vld [vmem:[%s946_s2] sm:$0xff]  ;;  %v31_v5 = vld [vmem:[%s944_s0 + $0x8] sm:$0xff]  ;;  %v795_v12 = vmov 0   ;;  %v796_v22 = vmov 0.0  }
   0x5   :  { %709 = vmatpush3.msra.mxu0 %v34_v1  ;;  %v130_v6 = vld [vmem:[%s948_s4 + $0x18] sm:$0xff]  ;;  %v129_v7 = vld [vmem:[%s948_s4 + $0x10] sm:$0xff]  ;;  %v128_v8 = vld [vmem:[%s948_s4 + $0x8] sm:$0xff]  ;;  %764 = vset.pattern.permute.xlu0 %v795_v12  ;;  %vm797_vm3 = vmmov 0   ;;  %vm235_vm5 = vcmask 15360   ;;  %vm338_vm7 = vcmask 64512  }
   0x6   :  { %710 = vmatprep.subr.mxu0 %v33_v3  ;;  %717 = vmatprep.subr.mxu1 %v130_v6  ;;  %v127_v9 = vld [vmem:[%s948_s4] sm:$0xff]  ;;  %v220_v10 = vld [vmem:[%s945_s1 + $0x8] sm:$0xff]  ;;  %vm493_vm8 = vcmask 1041409   ;;  %vm653_vm9 = vcmask 254976  }
   0x7   :  { %711 = vmatpush3.msra.mxu0 %v33_v3  ;;  %718 = vmatpush3.msra.mxu1 %v130_v6  ;;  %v219_v11 = vld [vmem:[%s945_s1] sm:$0xff]  ;;  %vm222_vm1 = vcmp.gt.f32.partialorder %v220_v10, 0.0  ;;  %v577_v10 = vld [vmem:[%s950_s6 + $0x38] sm:$0xff] }
   0x8   :  { %712 = vmatprep.subr.mxu0 %v32_v4  ;;  %719 = vmatprep.subr.mxu1 %v129_v7  ;;  %vm221_vm2 = vcmp.gt.f32.partialorder %v219_v11, 0.0  ;;  %v224_v13 = vsel %vm222_vm1, 1, %v795_v12  ;;  %v669_v15 = vld [vmem:[%s947_s3] ss:$0 sm:$0xff]  ;;  %v487_v11 = vld [vmem:[%s950_s6 + $0x8] sm:$0xff] }
   0x9   :  { %713 = vmatpush3.msra.mxu0 %v32_v4  ;;  %720 = vmatpush3.msra.mxu1 %v129_v7  ;;  %v223_v14 = vsel %vm221_vm2, 1, %v795_v12  ;;  %v672_v24 = vld [vmem:[%s949_s5] ss:$0 sm:$0xff]  ;;  %v489_v7 = vld [vmem:[%s950_s6 + $0x18] sm:$0xff]  ;;  %v576_v12 = vld [vmem:[%s950_s6 + $0x30] sm:$0xff] }
   0xa   :  { %715 = vmatmul.mubr.msk.f32.vlgmr.msra.gmra.mxu0 %vm43_vm0, %v31_v5  ;;  %721 = vmatprep.subr.mxu1 %v128_v8 }
   0xb   :  { %722 = vmatpush3.msra.mxu1 %v128_v8  ;;  %229 = vperm.xlu0 %764, %v224_v13   ;;  %v486_v13 = vld [vmem:[%s950_s6] sm:$0xff] }
   0xc   :  { %723 = vmatprep.subr.mxu1 %v127_v9  ;;  %728 = vmatprep.subr.mxu0 %v796_v22 }
   0xd   :  { %724 = vmatpush3.msra.mxu1 %v127_v9  ;;  %729 = vmatpush3.msra.mxu0 %v30_v2  ;;  %v488_v9 = vld [vmem:[%s950_s6 + $0x10] sm:$0xff] }
   0xe   :  { %733 = vmatprep.subr.mxu1 %v796_v22  ;;  %730 = vmatprep.mubr.msk.f32.mxu0 %vm797_vm3, %v796_v22 }
   0xf   :  { %226 = vperm.xlu0 %764, %v223_v14   ;;  %738 = vmatprep.subr.mxu0 %v796_v22  ;;  %v575_v14 = vld [vmem:[%s950_s6 + $0x28] sm:$0xff] }
  0x86   :  { %v230_v23 = vpop.permute.xlu0 %229 }
  0x87   :  { %vm232_vm4 = vcmp.eq.s32.totalorder %v230_v23, 1 }
  0x8a   :  { %v227_v27 = vpop.permute.xlu0 %226 }
  0x8b   :  { %vm231_vm6 = vcmp.eq.s32.totalorder %v227_v27, 1 }
  0xca   :  { %v716_v16 = vpop.f32.mrf.mxu0 }
  0xcb   :  { %v122_v17 = vadd.f32 %v716_v16, %v669_v15 }
  0xcc   :  { %v116_v18 = vpop.f32.mrf.mxu0 }
  0xcd   :  { %v117_v19 = vadd.f32 %v669_v15, %v116_v18  ;;  %v126_v21 = vmax.f32 %v122_v17, 0.0  ;;  %v574_v15 = vld [vmem:[%s950_s6 + $0x20] sm:$0xff]  ;;  %s798_s6 = smov [#allocation2]  }
  0xce   :  { %s661_s0 = sshll.u32 %s798_s6, 4  ;;  %s662_s0 = int_to_ptr.vmem [resolvable:$true] %s661_s0 }
  0xcf   :  { %v125_v20 = vmax.f32 %v117_v19, 0.0  ;;  %s773_s22 = scalar_lea.vmem %s662_s0, 32  ;;  %p778_p1 = scmp.lt.s32.totalorder %s662_s0, %s662_s0 }
  0xd0   :  { %p774_p0 = scmp.ne.s32.totalorder %s662_s0, %s773_s22  ;;  %p779_p2 = scmp.lt.s32.totalorder %s773_s22, %s773_s22 }
  0xd1   :  { %725 = vmatprep.mubr.msk.f32.mxu1 %vm43_vm0, %v125_v20 }
  0xd2   :  { %726 = vmatmul.mubr.msk.f32.vlgmr.msra.gmra.mxu1 %vm43_vm0, %v126_v21  ;;  %p780_p3 = por %p779_p2, %p778_p1 }
  0xd3   :  { %734 = vmatpush3.msra.mxu1 %v31_v5  ;;  %735 = vmatprep.mubr.msk.f32.mxu1 %vm797_vm3, %v796_v22 }
  0xd4   :  { %749 = vmatprep.subr.mxu1 %v796_v22  ;;  %p781_p4 = pnand %p780_p3, %p774_p0 }
 0x192   :  { %v727_v25 = vpop.f32.mrf.mxu1 }
 0x193   :  { %v216_v26 = vadd.f32 %v727_v25, %v672_v24 }
 0x194   :  { %v210_v28 = vpop.f32.mrf.mxu1 }
 0x195   :  { %v234_v29 = vsel %vm232_vm4, -1e+09, %v216_v26  ;;  %v211_v30 = vadd.f32 %v672_v24, %v210_v28 }
 0x196   :  { %v243_v31 = vsel %vm235_vm5, %v234_v29, -inf }
 0x197   :  { %v244_v32 = vrot.slane %v243_v31, 4  ;;  %v233_v33 = vsel %vm231_vm6, -1e+09, %v211_v30 }
 0x198   :  { %v236_v34 = vsel %vm235_vm5, %v233_v33, -inf }
 0x199   :  { %v245_v35 = vmax.f32 %v243_v31, %v244_v32  ;;  %v237_v36 = vrot.slane %v236_v34, 4 }
 0x19b   :  { %v246_v37 = vrot.slane %v245_v35, 2  ;;  %v238_v38 = vmax.f32 %v236_v34, %v237_v36 }
 0x19d   :  { %v247_v39 = vmax.f32 %v245_v35, %v246_v37  ;;  %v239_v40 = vrot.slane %v238_v38, 2 }
 0x19f   :  { %v248_v41 = vrot.slane %v247_v39, 1  ;;  %v240_v42 = vmax.f32 %v238_v38, %v239_v40 }
 0x1a1   :  { %v249_v43 = vmax.f32 %v247_v39, %v248_v41  ;;  %v241_v44 = vrot.slane %v240_v42, 1 }
 0x1a3   :  { %v251_v45 = vsub.f32 %v234_v29, %v249_v43  ;;  %v242_v46 = vmax.f32 %v240_v42, %v241_v44 }
 0x1a5   :  { %v254_v47 = vmul.f32 1.442695, %v251_v45  ;;  %v250_v48 = vsub.f32 %v233_v33, %v242_v46 }
 0x1a7   :  { %765 = vpow2.f32 %v254_v47  ;;  %v252_v49 = vmul.f32 1.442695, %v250_v48 }
 0x1a9   :  { %767 = vpow2.f32 %v252_v49 }
 0x1b4   :  { %v766_v50 = vpop.eup %765 }
 0x1b5   :  { %v263_v51 = vsel %vm235_vm5, %v766_v50, 0.0 }
 0x1b6   :  { %v768_v52 = vpop.eup %767  ;;  %v264_v53 = vrot.slane %v263_v51, 4 }
 0x1b7   :  { %v256_v54 = vsel %vm235_vm5, %v768_v52, 0.0 }
 0x1b8   :  { %v265_v55 = vadd.f32 %v264_v53, %v263_v51  ;;  %v257_v56 = vrot.slane %v256_v54, 4 }
 0x1ba   :  { %v266_v57 = vrot.slane %v265_v55, 2  ;;  %v258_v58 = vadd.f32 %v257_v56, %v256_v54 }
 0x1bc   :  { %v267_v59 = vadd.f32 %v266_v57, %v265_v55  ;;  %v259_v60 = vrot.slane %v258_v58, 2 }
 0x1be   :  { %v268_v61 = vrot.slane %v267_v59, 1  ;;  %v260_v62 = vadd.f32 %v259_v60, %v258_v58 }
 0x1c0   :  { %v269_v63 = vadd.f32 %v268_v61, %v267_v59  ;;  %v261_v0 = vrot.slane %v260_v62, 1 }
 0x1c2   :  { %769 = vrcp.f32 %v269_v63  ;;  %v262_v1 = vadd.f32 %v261_v0, %v260_v62 }
 0x1c4   :  { %771 = vrcp.f32 %v262_v1 }
 0x1cf   :  { %v770_v2 = vpop.eup %769 }
 0x1d0   :  { %v273_v3 = vmul.f32 %v770_v2, %v766_v50 }
 0x1d1   :  { %v772_v4 = vpop.eup %771 }
 0x1d2   :  { %306 = vxpose.xlu1.b32.start.end [1/1] (short) (narrow) %v273_v3, 8  ;;  %v272_v5 = vmul.f32 %v772_v4, %v768_v52 }
 0x1d6   :  { %274 = vxpose.xlu1.b32.start.end [1/1] (short) (narrow) %v272_v5, 8 }
 0x24e   :  { %v322_v6 = vpop.trf.xlu1 }
 0x24f   :  { %736 = vmatmul.mubr.msk.f32.vlgmr.msra.gmra.mxu1 %vm338_vm7, %v322_v6 }
 0x250   :  { %757 = vmatprep.mubr.msk.f32.mxu1 %vm797_vm3, %v796_v22  ;;  %750 = vmatpush3.msra.mxu1 %v577_v10 }
 0x251   :  { %751 = vmatprep.subr.mxu1 %v796_v22 }
 0x252   :  { %v290_v8 = vpop.trf.xlu1  ;;  %752 = vmatpush3.msra.mxu1 %v576_v12 }
 0x253   :  { %731 = vmatmul.mubr.msk.f32.vlgmr.msra.gmra.mxu0 %vm338_vm7, %v290_v8  ;;  %753 = vmatprep.subr.mxu1 %v796_v22 }
 0x254   :  { %739 = vmatpush3.msra.mxu0 %v489_v7  ;;  %746 = vmatprep.mubr.msk.f32.mxu0 %vm797_vm3, %v796_v22 }
 0x255   :  { %740 = vmatprep.subr.mxu0 %v796_v22  ;;  %754 = vmatpush3.msra.mxu1 %v575_v14 }
 0x256   :  { %741 = vmatpush3.msra.mxu0 %v488_v9  ;;  %755 = vmatprep.subr.mxu1 %v796_v22 }
 0x257   :  { %742 = vmatprep.subr.mxu0 %v796_v22  ;;  %756 = vmatpush3.msra.mxu1 %v574_v15 }
 0x258   :  { %743 = vmatpush3.msra.mxu0 %v487_v11 }
 0x259   :  { %744 = vmatprep.subr.mxu0 %v796_v22  ;;  %v678_v22 = vld [vmem:[%s951_s7] ss:$0 sm:$0xff] }
 0x25a   :  { %745 = vmatpush3.msra.mxu0 %v486_v13 }
 0x30f   :  { %v481_v16 = vpop.f32.mrf.mxu1 }
 0x310   :  { %v492_v18 = vrot.slane %v481_v16, 7 }
 0x311   :  { %v737_v17 = vpop.f32.mrf.mxu1 }
 0x313   :  { %v408_v19 = vpop.f32.mrf.mxu0 }
 0x314   :  { %v494_v20 = vsel %vm493_vm8, %v492_v18, %v408_v19  ;;  %v578_v21 = vrot.slane %v408_v19, 1 }
 0x315   :  { %v732_v23 = vpop.f32.mrf.mxu0  ;;  %747 = vmatmul.mubr.msk.f32.vlgmr.msra.gmra.mxu0 %vm43_vm0, %v494_v20 }
 0x316   :  { %v579_v24 = vsel %vm493_vm8, %v481_v16, %v578_v21 }
 0x317   :  { %758 = vmatmul.mubr.msk.f32.vlgmr.msra.gmra.mxu1 %vm43_vm0, %v579_v24 }
 0x3d5   :  { %v563_v25 = vpop.f32.mrf.mxu0 }
 0x3d6   :  { %v573_v26 = vadd.f32 %v678_v22, %v563_v25 }
 0x3d7   :  { %v748_v27 = vpop.f32.mrf.mxu0  ;;  %v648_v28 = vpop.f32.mrf.mxu1 }
 0x3d8   :  { %v652_v29 = vadd.f32 %v648_v28, %v573_v26 }
 0x3d9   :  { %v759_v30 = vpop.f32.mrf.mxu1 }
 0x3da   :  { %654 = vst.msk [vmem:[#allocation2] sm:$0x3] %vm653_vm9, %v652_v29 }
 0x3db   :  { %784 = shalt.err (!%p781_p4)
}
 0x3dc   :  { %664 = dma.vmem_to_hbm [thread:$0]  %s662_s0, 32, %s952_s8, [#allocation3]  }
 0x3dd   :  { %793 = dma.done.wait [#allocation3], 32  }
 0x3de   :  { %794 = vsyncadd [#allocation3], 4294967264 }
 0x3df   :  { %668 = vsyncpa [#allocation3], 1 }

// kernel: tpu_custom_call.1
= control target key start
LH: loop header
LB: loop body
LE: loop exit
PB: predicated region body
PF: predicated region fallthrough
CT: control target
= control target key end

     0   :  { %vm43_vm0 = vcmask 261120   ;;  %s944_s0 = inlined_call_operand.vmem [shape: f32[2,8,32], index: 0, kind: input, shape index: {}]   ;;  %s945_s1 = inlined_call_operand.vmem [shape: f32[2,8,1], index: 1, kind: input, shape index: {}]   ;;  %s946_s2 = inlined_call_operand.vmem [shape: f32[32,32], index: 2, kind: input, shape index: {}]   ;;  %s947_s3 = inlined_call_operand.vmem [shape: f32[1,32], index: 3, kind: input, shape index: {}]   ;;  %s948_s4 = inlined_call_operand.vmem [shape: f32[32,2], index: 4, kind: input, shape index: {}]   ;;  %s949_s5 = inlined_call_operand.vmem [shape: f32[1,2], index: 5, kind: input, shape index: {}]   ;;  %s950_s6 = inlined_call_operand.vmem [shape: f32[64,32], index: 6, kind: input, shape index: {}]   ;;  %s951_s7 = inlined_call_operand.vmem [shape: f32[1,32], index: 7, kind: input, shape index: {}]   ;;  %s952_s8 = inlined_call_operand.hbm [shape: f32[2,32], index: 8, kind: output, shape index: {}]  }
   0x1   :  { %v35_v0 = vld [vmem:[%s946_s2 + $0x18] sm:$0xff]  ;;  %v34_v1 = vld [vmem:[%s946_s2 + $0x10] sm:$0xff]  ;;  %v30_v2 = vld [vmem:[%s944_s0] sm:$0xff] }
   0x2   :  { %706 = vmatprep.subr.mxu0 %v35_v0  ;;  %v33_v3 = vld [vmem:[%s946_s2 + $0x8] sm:$0xff]  ;;  %714 = vmatprep.mubr.msk.f32.mxu0 %vm43_vm0, %v30_v2 }
   0x3   :  { %707 = vmatpush3.msra.mxu0 %v35_v0 }
   0x4   :  { %13 = vsyncpa [#allocation3], 0  ;;  %708 = vmatprep.subr.mxu0 %v34_v1  ;;  %v32_v4 = vld [vmem:[%s946_s2] sm:$0xff]  ;;  %v31_v5 = vld [vmem:[%s944_s0 + $0x8] sm:$0xff]  ;;  %v795_v12 = vmov 0   ;;  %v796_v22 = vmov 0.0  }
   0x5   :  { %709 = vmatpush3.msra.mxu0 %v34_v1  ;;  %v130_v6 = vld [vmem:[%s948_s4 + $0x18] sm:$0xff]  ;;  %v129_v7 = vld [vmem:[%s948_s4 + $0x10] sm:$0xff]  ;;  %v128_v8 = vld [vmem:[%s948_s4 + $0x8] sm:$0xff]  ;;  %764 = vset.pattern.permute.xlu0 %v795_v12  ;;  %vm797_vm3 = vmmov 0   ;;  %vm235_vm5 = vcmask 15360   ;;  %vm338_vm7 = vcmask 64512  }
   0x6   :  { %710 = vmatprep.subr.mxu0 %v33_v3  ;;  %717 = vmatprep.subr.mxu1 %v130_v6  ;;  %v127_v9 = vld [vmem:[%s948_s4] sm:$0xff]  ;;  %v220_v10 = vld [vmem:[%s945_s1 + $0x8] sm:$0xff]  ;;  %vm493_vm8 = vcmask 1041409   ;;  %vm653_vm9 = vcmask 254976  }
   0x7   :  { %711 = vmatpush3.msra.mxu0 %v33_v3  ;;  %718 = vmatpush3.msra.mxu1 %v130_v6  ;;  %v219_v11 = vld [vmem:[%s945_s1] sm:$0xff]  ;;  %vm222_vm1 = vcmp.gt.f32.partialorder %v220_v10, 0.0  ;;  %v577_v10 = vld [vmem:[%s950_s6 + $0x38] sm:$0xff] }
   0x8   :  { %712 = vmatprep.subr.mxu0 %v32_v4  ;;  %719 = vmatprep.subr.mxu1 %v129_v7  ;;  %vm221_vm2 = vcmp.gt.f32.partialorder %v219_v11, 0.0  ;;  %v224_v13 = vsel %vm222_vm1, 1, %v795_v12  ;;  %v669_v15 = vld [vmem:[%s947_s3] ss:$0 sm:$0xff]  ;;  %v487_v11 = vld [vmem:[%s950_s6 + $0x8] sm:$0xff] }
   0x9   :  { %713 = vmatpush3.msra.mxu0 %v32_v4  ;;  %720 = vmatpush3.msra.mxu1 %v129_v7  ;;  %v223_v14 = vsel %vm221_vm2, 1, %v795_v12  ;;  %v672_v24 = vld [vmem:[%s949_s5] ss:$0 sm:$0xff]  ;;  %v489_v7 = vld [vmem:[%s950_s6 + $0x18] sm:$0xff]  ;;  %v576_v12 = vld [vmem:[%s950_s6 + $0x30] sm:$0xff] }
   0xa   :  { %715 = vmatmul.mubr.msk.f32.vlgmr.msra.gmra.mxu0 %vm43_vm0, %v31_v5  ;;  %721 = vmatprep.subr.mxu1 %v128_v8 }
   0xb   :  { %722 = vmatpush3.msra.mxu1 %v128_v8  ;;  %229 = vperm.xlu0 %764, %v224_v13   ;;  %v486_v13 = vld [vmem:[%s950_s6] sm:$0xff] }
   0xc   :  { %723 = vmatprep.subr.mxu1 %v127_v9  ;;  %728 = vmatprep.subr.mxu0 %v796_v22 }
   0xd   :  { %724 = vmatpush3.msra.mxu1 %v127_v9  ;;  %729 = vmatpush3.msra.mxu0 %v30_v2  ;;  %v488_v9 = vld [vmem:[%s950_s6 + $0x10] sm:$0xff] }
   0xe   :  { %733 = vmatprep.subr.mxu1 %v796_v22  ;;  %730 = vmatprep.mubr.msk.f32.mxu0 %vm797_vm3, %v796_v22 }
   0xf   :  { %226 = vperm.xlu0 %764, %v223_v14   ;;  %738 = vmatprep.subr.mxu0 %v796_v22  ;;  %v575_v14 = vld [vmem:[%s950_s6 + $0x28] sm:$0xff] }
  0x86   :  { %v230_v23 = vpop.permute.xlu0 %229 }
  0x87   :  { %vm232_vm4 = vcmp.eq.s32.totalorder %v230_v23, 1 }
  0x8a   :  { %v227_v27 = vpop.permute.xlu0 %226 }
  0x8b   :  { %vm231_vm6 = vcmp.eq.s32.totalorder %v227_v27, 1 }
  0xca   :  { %v716_v16 = vpop.f32.mrf.mxu0 }
  0xcb   :  { %v122_v17 = vadd.f32 %v716_v16, %v669_v15 }
  0xcc   :  { %v116_v18 = vpop.f32.mrf.mxu0 }
  0xcd   :  { %v117_v19 = vadd.f32 %v669_v15, %v116_v18  ;;  %v126_v21 = vmax.f32 %v122_v17, 0.0  ;;  %v574_v15 = vld [vmem:[%s950_s6 + $0x20] sm:$0xff]  ;;  %s798_s6 = smov [#allocation2]  }
  0xce   :  { %s661_s0 = sshll.u32 %s798_s6, 4  ;;  %s662_s0 = int_to_ptr.vmem [resolvable:$true] %s661_s0 }
  0xcf   :  { %v125_v20 = vmax.f32 %v117_v19, 0.0  ;;  %s773_s22 = scalar_lea.vmem %s662_s0, 32  ;;  %p778_p1 = scmp.lt.s32.totalorder %s662_s0, %s662_s0 }
  0xd0   :  { %p774_p0 = scmp.ne.s32.totalorder %s662_s0, %s773_s22  ;;  %p779_p2 = scmp.lt.s32.totalorder %s773_s22, %s773_s22 }
  0xd1   :  { %725 = vmatprep.mubr.msk.f32.mxu1 %vm43_vm0, %v125_v20 }
  0xd2   :  { %726 = vmatmul.mubr.msk.f32.vlgmr.msra.gmra.mxu1 %vm43_vm0, %v126_v21  ;;  %p780_p3 = por %p779_p2, %p778_p1 }
  0xd3   :  { %734 = vmatpush3.msra.mxu1 %v31_v5  ;;  %735 = vmatprep.mubr.msk.f32.mxu1 %vm797_vm3, %v796_v22 }
  0xd4   :  { %749 = vmatprep.subr.mxu1 %v796_v22  ;;  %p781_p4 = pnand %p780_p3, %p774_p0 }
 0x192   :  { %v727_v25 = vpop.f32.mrf.mxu1 }
 0x193   :  { %v216_v26 = vadd.f32 %v727_v25, %v672_v24 }
 0x194   :  { %v210_v28 = vpop.f32.mrf.mxu1 }
 0x195   :  { %v234_v29 = vsel %vm232_vm4, -1e+09, %v216_v26  ;;  %v211_v30 = vadd.f32 %v672_v24, %v210_v28 }
 0x196   :  { %v243_v31 = vsel %vm235_vm5, %v234_v29, -inf }
 0x197   :  { %v244_v32 = vrot.slane %v243_v31, 4  ;;  %v233_v33 = vsel %vm231_vm6, -1e+09, %v211_v30 }
 0x198   :  { %v236_v34 = vsel %vm235_vm5, %v233_v33, -inf }
 0x199   :  { %v245_v35 = vmax.f32 %v243_v31, %v244_v32  ;;  %v237_v36 = vrot.slane %v236_v34, 4 }
 0x19b   :  { %v246_v37 = vrot.slane %v245_v35, 2  ;;  %v238_v38 = vmax.f32 %v236_v34, %v237_v36 }
 0x19d   :  { %v247_v39 = vmax.f32 %v245_v35, %v246_v37  ;;  %v239_v40 = vrot.slane %v238_v38, 2 }
 0x19f   :  { %v248_v41 = vrot.slane %v247_v39, 1  ;;  %v240_v42 = vmax.f32 %v238_v38, %v239_v40 }
 0x1a1   :  { %v249_v43 = vmax.f32 %v247_v39, %v248_v41  ;;  %v241_v44 = vrot.slane %v240_v42, 1 }
 0x1a3   :  { %v251_v45 = vsub.f32 %v234_v29, %v249_v43  ;;  %v242_v46 = vmax.f32 %v240_v42, %v241_v44 }
 0x1a5   :  { %v254_v47 = vmul.f32 1.442695, %v251_v45  ;;  %v250_v48 = vsub.f32 %v233_v33, %v242_v46 }
 0x1a7   :  { %765 = vpow2.f32 %v254_v47  ;;  %v252_v49 = vmul.f32 1.442695, %v250_v48 }
 0x1a9   :  { %767 = vpow2.f32 %v252_v49 }
 0x1b4   :  { %v766_v50 = vpop.eup %765 }
 0x1b5   :  { %v263_v51 = vsel %vm235_vm5, %v766_v50, 0.0 }
 0x1b6   :  { %v768_v52 = vpop.eup %767  ;;  %v264_v53 = vrot.slane %v263_v51, 4 }
 0x1b7   :  { %v256_v54 = vsel %vm235_vm5, %v768_v52, 0.0 }
 0x1b8   :  { %v265_v55 = vadd.f32 %v264_v53, %v263_v51  ;;  %v257_v56 = vrot.slane %v256_v54, 4 }
 0x1ba   :  { %v266_v57 = vrot.slane %v265_v55, 2  ;;  %v258_v58 = vadd.f32 %v257_v56, %v256_v54 }
 0x1bc   :  { %v267_v59 = vadd.f32 %v266_v57, %v265_v55  ;;  %v259_v60 = vrot.slane %v258_v58, 2 }
 0x1be   :  { %v268_v61 = vrot.slane %v267_v59, 1  ;;  %v260_v62 = vadd.f32 %v259_v60, %v258_v58 }
 0x1c0   :  { %v269_v63 = vadd.f32 %v268_v61, %v267_v59  ;;  %v261_v0 = vrot.slane %v260_v62, 1 }
 0x1c2   :  { %769 = vrcp.f32 %v269_v63  ;;  %v262_v1 = vadd.f32 %v261_v0, %v260_v62 }
 0x1c4   :  { %771 = vrcp.f32 %v262_v1 }
 0x1cf   :  { %v770_v2 = vpop.eup %769 }
 0x1d0   :  { %v273_v3 = vmul.f32 %v770_v2, %v766_v50 }
 0x1d1   :  { %v772_v4 = vpop.eup %771 }
 0x1d2   :  { %306 = vxpose.xlu1.b32.start.end [1/1] (short) (narrow) %v273_v3, 8  ;;  %v272_v5 = vmul.f32 %v772_v4, %v768_v52 }
 0x1d6   :  { %274 = vxpose.xlu1.b32.start.end [1/1] (short) (narrow) %v272_v5, 8 }
 0x24e   :  { %v322_v6 = vpop.trf.xlu1 }
 0x24f   :  { %736 = vmatmul.mubr.msk.f32.vlgmr.msra.gmra.mxu1 %vm338_vm7, %v322_v6 }
 0x250   :  { %757 = vmatprep.mubr.msk.f32.mxu1 %vm797_vm3, %v796_v22  ;;  %750 = vmatpush3.msra.mxu1 %v577_v10 }
 0x251   :  { %751 = vmatprep.subr.mxu1 %v796_v22 }
 0x252   :  { %v290_v8 = vpop.trf.xlu1  ;;  %752 = vmatpush3.msra.mxu1 %v576_v12 }
 0x253   :  { %731 = vmatmul.mubr.msk.f32.vlgmr.msra.gmra.mxu0 %vm338_vm7, %v290_v8  ;;  %753 = vmatprep.subr.mxu1 %v796_v22 }
 0x254   :  { %739 = vmatpush3.msra.mxu0 %v489_v7  ;;  %746 = vmatprep.mubr.msk.f32.mxu0 %vm797_vm3, %v796_v22 }
 0x255   :  { %740 = vmatprep.subr.mxu0 %v796_v22  ;;  %754 = vmatpush3.msra.mxu1 %v575_v14 }
 0x256   :  { %741 = vmatpush3.msra.mxu0 %v488_v9  ;;  %755 = vmatprep.subr.mxu1 %v796_v22 }
 0x257   :  { %742 = vmatprep.subr.mxu0 %v796_v22  ;;  %756 = vmatpush3.msra.mxu1 %v574_v15 }
 0x258   :  { %743 = vmatpush3.msra.mxu0 %v487_v11 }
 0x259   :  { %744 = vmatprep.subr.mxu0 %v796_v22  ;;  %v678_v22 = vld [vmem:[%s951_s7] ss:$0 sm:$0xff] }
 0x25a   :  { %745 = vmatpush3.msra.mxu0 %v486_v13 }
 0x30f   :  { %v481_v16 = vpop.f32.mrf.mxu1 }
 0x310   :  { %v492_v18 = vrot.slane %v481_v16, 7 }
 0x311   :  { %v737_v17 = vpop.f32.mrf.mxu1 }
 0x313   :  { %v408_v19 = vpop.f32.mrf.mxu0 }
 0x314   :  { %v494_v20 = vsel %vm493_vm8, %v492_v18, %v408_v19  ;;  %v578_v21 = vrot.slane %v408_v19, 1 }
 0x315   :  { %v732_v23 = vpop.f32.mrf.mxu0  ;;  %747 = vmatmul.mubr.msk.f32.vlgmr.msra.gmra.mxu0 %vm43_vm0, %v494_v20 }
 0x316   :  { %v579_v24 = vsel %vm493_vm8, %v481_v16, %v578_v21 }
 0x317   :  { %758 = vmatmul.mubr.msk.f32.vlgmr.msra.gmra.mxu1 %vm43_vm0, %v579_v24 }
 0x3d5   :  { %v563_v25 = vpop.f32.mrf.mxu0 }
 0x3d6   :  { %v573_v26 = vadd.f32 %v678_v22, %v563_v25 }
 0x3d7   :  { %v748_v27 = vpop.f32.mrf.mxu0  ;;  %v648_v28 = vpop.f32.mrf.mxu1 }
 0x3d8   :  { %v652_v29 = vadd.f32 %v648_v28, %v573_v26 }
 0x3d9   :  { %v759_v30 = vpop.f32.mrf.mxu1 }
 0x3da   :  { %654 = vst.msk [vmem:[#allocation2] sm:$0x3] %vm653_vm9, %v652_v29 }
 0x3db   :  { %784 = shalt.err (!%p781_p4)
}
 0x3dc   :  { %664 = dma.vmem_to_hbm [thread:$0]  %s662_s0, 32, %s952_s8, [#allocation3]  }
 0x3dd   :  { %793 = dma.done.wait [#allocation3], 32  }
 0x3de   :  { %794 = vsyncadd [#allocation3], 4294967264 }
 0x3df   :  { %668 = vsyncpa [#allocation3], 1 }

</bundles_post_ra>
